<compile_context>
chip_gen: v7x
topology: tpu7x:2x2x1
jax: 0.10.0
libtpu: 0.0.40
codegen_flags: <defaults>
</compile_context>

<pallas_src>
import functools

import numpy as np
import jax
import jax.numpy as jnp
from jax import lax
from jax.experimental import pallas as pl
from jax.experimental.pallas import tpu as pltpu


def _convnet4_kernel(x_ref, tm_ref, pm_ref, w1_ref, b1_ref, w2_ref, b2_ref,
                     o_ref, *, W, HW, BT):
    G = x_ref.shape[1]
    offs = [(dy - 1) * W + (dx - 1) for dy in range(3) for dx in range(3)]
    masks = tm_ref[...].astype(jnp.float32)                        # (9, G)

    def lroll(v, off):
        # y[:, i] = v[:, (i + off) % G]  ==  roll by -off  (XLU lane rotation)
        s = (-off) % G
        return v if s == 0 else pltpu.roll(v, s, axis=1)

    def im2col_bf16(v):
        # v: (C, G) f32 -> masked bf16 im2col matrix (9*C, G); mask multiply in f32,
        # cast only right before the MXU dot (v5e-friendly).
        return jnp.concatenate(
            [(lroll(v, offs[k]) * masks[k:k + 1, :]).astype(jnp.bfloat16)
             for k in range(9)], axis=0)

    x = x_ref[...]                                                  # (Cin, G) f32

    # block 1: BN (folded into w1/b1) -> conv3x3 pad=1 (single im2col matmul) -> ReLU
    h1 = jnp.dot(w1_ref[...], im2col_bf16(x),
                 preferred_element_type=jnp.float32)                # (hid, G)
    h1 = jnp.maximum(h1 + b1_ref[...], 0.0)

    # block 2: BN (folded into w2/b2) -> conv3x3 pad=1 -> ReLU
    y = jnp.dot(w2_ref[...], im2col_bf16(h1),
                preferred_element_type=jnp.float32)                 # (zd, G)
    y = jnp.maximum(y + b2_ref[...], 0.0)

    # MaxPool2d(2) + spatial mean: max of the 4 pool-window positions via lane rolls
    # (wrapped lanes only land on odd, discarded positions), then the even-position /
    # (1/npool) mask and a per-image lane reduction.
    m4 = jnp.maximum(jnp.maximum(y, lroll(y, 1)),
                     jnp.maximum(lroll(y, W), lroll(y, W + 1)))     # (zd, G)
    mm = m4 * pm_ref[...]                                           # (zd, G)
    out = jnp.concatenate(
        [jnp.sum(mm[:, b * HW:(b + 1) * HW], axis=-1, keepdims=True)
         for b in range(BT)], axis=-1)                              # (zd, BT)
    o_ref[0] = out.astype(o_ref.dtype)


def _pick_batch_tile(N, HW, max_lanes=4096):
    # Largest divisor of N with BT*HW <= max_lanes, preferring >= 2 grid steps
    # (so the "parallel" grid axis can be sharded across v7x's two TensorCores).
    divs = [d for d in range(1, N + 1) if N % d == 0 and d * HW <= max_lanes]
    if not divs:
        return 1
    multi = [d for d in divs if N // d >= 2]
    return max(multi) if multi else max(divs)


def convnet4_forward(x_nchw, params, *, batch_tile=None, eps=1e-5):
    """params = (w1_oihw, cb1, g1, be1, rm1, rv1, w2_oihw, cb2, g2, be2, rm2, rv2)."""
    (w1_oihw, cb1, g1, be1, rm1, rv1,
     w2_oihw, cb2, g2, be2, rm2, rv2) = params
    N, Cin, H, W = x_nchw.shape
    hid = w1_oihw.shape[0]
    zd = w2_oihw.shape[0]
    HW = H * W
    assert H % 2 == 0 and W % 2 == 0
    BT = _pick_batch_tile(N, HW) if batch_tile is None else batch_tile
    assert N % BT == 0
    G = BT * HW

    # ---- batch->lane fold done once in XLA (cheap transpose), not in-kernel ----
    x = jnp.transpose(x_nchw.reshape(N, Cin, HW).astype(jnp.float32),
                      (1, 0, 2)).reshape(Cin, N * HW)               # (Cin, N*HW)

    # ---- trace-time constants: tap-validity masks & pooling mask (numpy) ----
    hh = np.arange(HW) // W
    ww = np.arange(HW) % W
    tm_hw = np.ones((9, HW), np.float32)
    for k, (dy, dx) in enumerate([(a, b) for a in range(3) for b in range(3)]):
        valid = np.ones(HW, dtype=bool)
        if dy == 0:
            valid &= hh > 0
        if dy == 2:
            valid &= hh < H - 1
        if dx == 0:
            valid &= ww > 0
        if dx == 2:
            valid &= ww < W - 1
        tm_hw[k] = valid.astype(np.float32)
    tm = jnp.asarray(np.tile(tm_hw, (1, BT)), dtype=jnp.bfloat16)   # (9, G)

    even = (((hh % 2) == 0) & ((ww % 2) == 0)).astype(np.float32)
    even /= float((H // 2) * (W // 2))
    pm = jnp.asarray(np.tile(even, BT)[None, :], dtype=jnp.float32)  # (1, G)

    # ---- fold eval-mode BN (scale/shift) + conv bias into im2col weights and a
    # ---- precomputed per-position bias map (accounts for zero padding via tm) ----
    tm_hw_j = jnp.asarray(tm_hw)
    s1 = g1 / jnp.sqrt(rv1 + eps); t1 = be1 - rm1 * s1
    s2 = g2 / jnp.sqrt(rv2 + eps); t2 = be2 - rm2 * s2
    w1_k = jnp.transpose(w1_oihw, (0, 2, 3, 1)).reshape(hid, 9, Cin)
    w2_k = jnp.transpose(w2_oihw, (0, 2, 3, 1)).reshape(zd, 9, hid)
    w1m = (w1_k * s1[None, None, :]).reshape(hid, 9 * Cin).astype(jnp.bfloat16)
    w2m = (w2_k * s2[None, None, :]).reshape(zd, 9 * hid).astype(jnp.bfloat16)
    b1 = jnp.tile(cb1[:, None] + jnp.einsum('hkc,c->hk', w1_k, t1) @ tm_hw_j,
                  (1, BT)).astype(jnp.float32)                      # (hid, G)
    b2 = jnp.tile(cb2[:, None] + jnp.einsum('hkc,c->hk', w2_k, t2) @ tm_hw_j,
                  (1, BT)).astype(jnp.float32)                      # (zd, G)

    kernel = functools.partial(_convnet4_kernel, W=W, HW=HW, BT=BT)

    flops = 2 * N * HW * (hid * 9 * Cin + zd * 9 * hid)
    bytes_accessed = (4 * (x.size + (N // BT) * zd * BT + b1.size + b2.size + pm.size)
                      + 2 * (tm.size + w1m.size + w2m.size))

    grid_spec = pltpu.PrefetchScalarGridSpec(
        num_scalar_prefetch=0,
        grid=(N // BT,),
        in_specs=[
            pl.BlockSpec((Cin, G), lambda n: (0, n)),        # x (batch folded in lanes)
            pl.BlockSpec((9, G), lambda n: (0, 0)),          # tap-validity masks (bf16)
            pl.BlockSpec((1, G), lambda n: (0, 0)),          # even-pos / (1/npool) mask
            pl.BlockSpec((hid, 9 * Cin), lambda n: (0, 0)),  # conv1 weights (bf16, BN-scaled)
            pl.BlockSpec((hid, G), lambda n: (0, 0)),        # conv1 bias map (BN folded)
            pl.BlockSpec((zd, 9 * hid), lambda n: (0, 0)),   # conv2 weights (bf16, BN-scaled)
            pl.BlockSpec((zd, G), lambda n: (0, 0)),         # conv2 bias map (BN folded)
        ],
        out_specs=pl.BlockSpec((1, zd, BT), lambda n: (n, 0, 0)),
    )
    out = pl.pallas_call(
        kernel,
        out_shape=jax.ShapeDtypeStruct((N // BT, zd, BT), jnp.float32),
        grid_spec=grid_spec,
        compiler_params=pltpu.CompilerParams(
            dimension_semantics=("parallel",)),
        cost_estimate=pl.CostEstimate(flops=flops, transcendentals=0,
                                      bytes_accessed=bytes_accessed),
    )(x, tm, pm, w1m, b1, w2m, b2)
    # (N//BT, zd, BT) -> (N, zd); tiny XLA transpose on the output.
    return jnp.transpose(out, (0, 2, 1)).reshape(N, zd)


if __name__ == "__main__":
    N, Cin, H, W = 2, 4, 16, 16        # small shapes; in_features=4
    hid, zd = 32, 32                   # hid_dim, z_dim
    eps = 1e-5

    key = jax.random.PRNGKey(0)
    ks = jax.random.split(key, 13)
    # conv1 / bn1 parameters (deterministic synthetic init)
    w1_oihw = 0.1 * jax.random.normal(ks[0], (hid, Cin, 3, 3), jnp.float32)
    cb1 = 0.1 * jax.random.normal(ks[1], (hid,), jnp.float32)
    g1 = 1.0 + 0.1 * jax.random.normal(ks[2], (Cin,), jnp.float32)
    be1 = 0.1 * jax.random.normal(ks[3], (Cin,), jnp.float32)
    rm1 = 0.1 * jax.random.normal(ks[4], (Cin,), jnp.float32)
    rv1 = 0.5 + jax.random.uniform(ks[5], (Cin,), jnp.float32)
    # conv2 / bn2 parameters
    w2_oihw = 0.1 * jax.random.normal(ks[6], (zd, hid, 3, 3), jnp.float32)
    cb2 = 0.1 * jax.random.normal(ks[7], (zd,), jnp.float32)
    g2 = 1.0 + 0.1 * jax.random.normal(ks[8], (hid,), jnp.float32)
    be2 = 0.1 * jax.random.normal(ks[9], (hid,), jnp.float32)
    rm2 = 0.1 * jax.random.normal(ks[10], (hid,), jnp.float32)
    rv2 = 0.5 + jax.random.uniform(ks[11], (hid,), jnp.float32)

    x_nchw = jax.random.normal(ks[12], (N, Cin, H, W), jnp.float32)

    params = (w1_oihw, cb1, g1, be1, rm1, rv1,
              w2_oihw, cb2, g2, be2, rm2, rv2)

    out = jax.block_until_ready(convnet4_forward(x_nchw, params))

    # pure-JAX f32 reference (same eval-mode BN semantics) for validation
    s1 = g1 / jnp.sqrt(rv1 + eps); t1 = be1 - rm1 * s1
    s2 = g2 / jnp.sqrt(rv2 + eps); t2 = be2 - rm2 * s2

    def ref(xx):
        h = xx * s1[None, :, None, None] + t1[None, :, None, None]
        h = lax.conv_general_dilated(h, w1_oihw, (1, 1), ((1, 1), (1, 1)),
                                     dimension_numbers=("NCHW", "OIHW", "NCHW"))
        h = jnp.maximum(h + cb1[None, :, None, None], 0.0)
        h = h * s2[None, :, None, None] + t2[None, :, None, None]
        h = lax.conv_general_dilated(h, w2_oihw, (1, 1), ((1, 1), (1, 1)),
                                     dimension_numbers=("NCHW", "OIHW", "NCHW"))
        h = jnp.maximum(h + cb2[None, :, None, None], 0.0)
        n, c, hh2, ww2 = h.shape
        h = h.reshape(n, c, hh2 // 2, 2, ww2 // 2, 2).max(axis=(3, 5))
        return h.mean(axis=(2, 3))

    expected = ref(x_nchw)
    # bf16 MXU operands (f32 accumulation) -> tolerance relaxed vs. the f32 reference
    np.testing.assert_allclose(np.asarray(out), np.asarray(expected),
                               rtol=3e-2, atol=3e-2)
    print("KERNEL_OK")
</pallas_src>

<mosaic_0001>
module attributes {stable_mosaic.version = 11 : i64} {
  func.func @_convnet4_kernel(%arg0: i32, %arg1: memref<4x256xf32, #tpu.memory_space<vmem>>, %arg2: memref<9x256xbf16, #tpu.memory_space<vmem>>, %arg3: memref<1x256xf32, #tpu.memory_space<vmem>>, %arg4: memref<32x36xbf16, #tpu.memory_space<vmem>>, %arg5: memref<32x256xf32, #tpu.memory_space<vmem>>, %arg6: memref<32x288xbf16, #tpu.memory_space<vmem>>, %arg7: memref<32x256xf32, #tpu.memory_space<vmem>>, %arg8: memref<1x32x1xf32, #tpu.memory_space<vmem>>) attributes {dimension_semantics = [#tpu.dimension_semantics<parallel>], iteration_bounds = array<i64: 2>, scalar_prefetch = 0 : i64, scratch_operands = 0 : i64, tpu.core_type = #tpu.core_type<tc>, window_params = [{transform_indices = @transform_0, window_bounds = array<i64: 4, 256>}, {pipeline_mode = #tpu.pipeline_mode<synchronous>, transform_indices = @transform_1, window_bounds = array<i64: 9, 256>}, {pipeline_mode = #tpu.pipeline_mode<synchronous>, transform_indices = @transform_2, window_bounds = array<i64: 1, 256>}, {pipeline_mode = #tpu.pipeline_mode<synchronous>, transform_indices = @transform_3, window_bounds = array<i64: 32, 36>}, {pipeline_mode = #tpu.pipeline_mode<synchronous>, transform_indices = @transform_4, window_bounds = array<i64: 32, 256>}, {pipeline_mode = #tpu.pipeline_mode<synchronous>, transform_indices = @transform_5, window_bounds = array<i64: 32, 288>}, {pipeline_mode = #tpu.pipeline_mode<synchronous>, transform_indices = @transform_6, window_bounds = array<i64: 32, 256>}, {transform_indices = @transform_7, window_bounds = array<i64: 1, 32, 1>}]} {
    %c0 = arith.constant 0 : index
    %c0_0 = arith.constant 0 : index
    %0 = vector.load %arg2[%c0, %c0_0] : memref<9x256xbf16, #tpu.memory_space<vmem>>, vector<9x256xbf16>
    %1 = arith.extf %0 : vector<9x256xbf16> to vector<9x256xf32>
    %c0_1 = arith.constant 0 : index
    %c0_2 = arith.constant 0 : index
    %2 = vector.load %arg1[%c0_1, %c0_2] : memref<4x256xf32, #tpu.memory_space<vmem>>, vector<4x256xf32>
    %c0_3 = arith.constant 0 : index
    %c0_4 = arith.constant 0 : index
    %3 = vector.load %arg4[%c0_3, %c0_4] : memref<32x36xbf16, #tpu.memory_space<vmem>>, vector<32x36xbf16>
    %c17_i32 = arith.constant 17 : i32
    %4 = tpu.dynamic_rotate %2 by %c17_i32 dim 1 : vector<4x256xf32>, i32 -> vector<4x256xf32>
    %5 = vector.extract_strided_slice %1 {offsets = [0, 0], sizes = [1, 256], strides = [1, 1]} : vector<9x256xf32> to vector<1x256xf32>
    %6 = vector.broadcast %5 : vector<1x256xf32> to vector<4x256xf32>
    %7 = arith.mulf %4, %6 : vector<4x256xf32>
    %8 = arith.truncf %7 : vector<4x256xf32> to vector<4x256xbf16>
    %c16_i32 = arith.constant 16 : i32
    %9 = tpu.dynamic_rotate %2 by %c16_i32 dim 1 : vector<4x256xf32>, i32 -> vector<4x256xf32>
    %10 = vector.extract_strided_slice %1 {offsets = [1, 0], sizes = [1, 256], strides = [1, 1]} : vector<9x256xf32> to vector<1x256xf32>
    %11 = vector.broadcast %10 : vector<1x256xf32> to vector<4x256xf32>
    %12 = arith.mulf %9, %11 : vector<4x256xf32>
    %13 = arith.truncf %12 : vector<4x256xf32> to vector<4x256xbf16>
    %c15_i32 = arith.constant 15 : i32
    %14 = tpu.dynamic_rotate %2 by %c15_i32 dim 1 : vector<4x256xf32>, i32 -> vector<4x256xf32>
    %15 = vector.extract_strided_slice %1 {offsets = [2, 0], sizes = [1, 256], strides = [1, 1]} : vector<9x256xf32> to vector<1x256xf32>
    %16 = vector.broadcast %15 : vector<1x256xf32> to vector<4x256xf32>
    %17 = arith.mulf %14, %16 : vector<4x256xf32>
    %18 = arith.truncf %17 : vector<4x256xf32> to vector<4x256xbf16>
    %c1_i32 = arith.constant 1 : i32
    %19 = tpu.dynamic_rotate %2 by %c1_i32 dim 1 : vector<4x256xf32>, i32 -> vector<4x256xf32>
    %20 = vector.extract_strided_slice %1 {offsets = [3, 0], sizes = [1, 256], strides = [1, 1]} : vector<9x256xf32> to vector<1x256xf32>
    %21 = vector.broadcast %20 : vector<1x256xf32> to vector<4x256xf32>
    %22 = arith.mulf %19, %21 : vector<4x256xf32>
    %23 = arith.truncf %22 : vector<4x256xf32> to vector<4x256xbf16>
    %24 = vector.extract_strided_slice %1 {offsets = [4, 0], sizes = [1, 256], strides = [1, 1]} : vector<9x256xf32> to vector<1x256xf32>
    %25 = vector.broadcast %24 : vector<1x256xf32> to vector<4x256xf32>
    %26 = arith.mulf %2, %25 : vector<4x256xf32>
    %27 = arith.truncf %26 : vector<4x256xf32> to vector<4x256xbf16>
    %c255_i32 = arith.constant 255 : i32
    %28 = tpu.dynamic_rotate %2 by %c255_i32 dim 1 : vector<4x256xf32>, i32 -> vector<4x256xf32>
    %29 = vector.extract_strided_slice %1 {offsets = [5, 0], sizes = [1, 256], strides = [1, 1]} : vector<9x256xf32> to vector<1x256xf32>
    %30 = vector.broadcast %29 : vector<1x256xf32> to vector<4x256xf32>
    %31 = arith.mulf %28, %30 : vector<4x256xf32>
    %32 = arith.truncf %31 : vector<4x256xf32> to vector<4x256xbf16>
    %c241_i32 = arith.constant 241 : i32
    %33 = tpu.dynamic_rotate %2 by %c241_i32 dim 1 : vector<4x256xf32>, i32 -> vector<4x256xf32>
    %34 = vector.extract_strided_slice %1 {offsets = [6, 0], sizes = [1, 256], strides = [1, 1]} : vector<9x256xf32> to vector<1x256xf32>
    %35 = vector.broadcast %34 : vector<1x256xf32> to vector<4x256xf32>
    %36 = arith.mulf %33, %35 : vector<4x256xf32>
    %37 = arith.truncf %36 : vector<4x256xf32> to vector<4x256xbf16>
    %c240_i32 = arith.constant 240 : i32
    %38 = tpu.dynamic_rotate %2 by %c240_i32 dim 1 : vector<4x256xf32>, i32 -> vector<4x256xf32>
    %39 = vector.extract_strided_slice %1 {offsets = [7, 0], sizes = [1, 256], strides = [1, 1]} : vector<9x256xf32> to vector<1x256xf32>
    %40 = vector.broadcast %39 : vector<1x256xf32> to vector<4x256xf32>
    %41 = arith.mulf %38, %40 : vector<4x256xf32>
    %42 = arith.truncf %41 : vector<4x256xf32> to vector<4x256xbf16>
    %c239_i32 = arith.constant 239 : i32
    %43 = tpu.dynamic_rotate %2 by %c239_i32 dim 1 : vector<4x256xf32>, i32 -> vector<4x256xf32>
    %44 = vector.extract_strided_slice %1 {offsets = [8, 0], sizes = [1, 256], strides = [1, 1]} : vector<9x256xf32> to vector<1x256xf32>
    %45 = vector.broadcast %44 : vector<1x256xf32> to vector<4x256xf32>
    %46 = arith.mulf %43, %45 : vector<4x256xf32>
    %47 = arith.truncf %46 : vector<4x256xf32> to vector<4x256xbf16>
    %48 = tpu.concatenate %8, %13, %18, %23, %27, %32, %37, %42, %47 in 0 : vector<4x256xbf16>, vector<4x256xbf16>, vector<4x256xbf16>, vector<4x256xbf16>, vector<4x256xbf16>, vector<4x256xbf16>, vector<4x256xbf16>, vector<4x256xbf16>, vector<4x256xbf16> -> vector<36x256xbf16>
    %cst = arith.constant dense<0.000000e+00> : vector<32x256xf32>
    %49 = tpu.matmul %3, %48, %cst {dimension_numbers = #tpu.dot_dimension_numbers<[1], [0], [0], [1], [0, 0, 1, 1], [], []>} : vector<32x36xbf16>, vector<36x256xbf16>, vector<32x256xf32> -> vector<32x256xf32>
    %c0_5 = arith.constant 0 : index
    %c0_6 = arith.constant 0 : index
    %50 = vector.load %arg5[%c0_5, %c0_6] : memref<32x256xf32, #tpu.memory_space<vmem>>, vector<32x256xf32>
    %51 = arith.addf %49, %50 : vector<32x256xf32>
    %cst_7 = arith.constant 0.000000e+00 : f32
    %52 = vector.broadcast %cst_7 : f32 to vector<32x256xf32>
    %53 = arith.maximumf %51, %52 : vector<32x256xf32>
    %c0_8 = arith.constant 0 : index
    %c0_9 = arith.constant 0 : index
    %54 = vector.load %arg6[%c0_8, %c0_9] : memref<32x288xbf16, #tpu.memory_space<vmem>>, vector<32x288xbf16>
    %c17_i32_10 = arith.constant 17 : i32
    %55 = tpu.dynamic_rotate %53 by %c17_i32_10 dim 1 : vector<32x256xf32>, i32 -> vector<32x256xf32>
    %56 = vector.extract_strided_slice %1 {offsets = [0, 0], sizes = [1, 256], strides = [1, 1]} : vector<9x256xf32> to vector<1x256xf32>
    %57 = vector.broadcast %56 : vector<1x256xf32> to vector<32x256xf32>
    %58 = arith.mulf %55, %57 : vector<32x256xf32>
    %59 = arith.truncf %58 : vector<32x256xf32> to vector<32x256xbf16>
    %c16_i32_11 = arith.constant 16 : i32
    %60 = tpu.dynamic_rotate %53 by %c16_i32_11 dim 1 : vector<32x256xf32>, i32 -> vector<32x256xf32>
    %61 = vector.extract_strided_slice %1 {offsets = [1, 0], sizes = [1, 256], strides = [1, 1]} : vector<9x256xf32> to vector<1x256xf32>
    %62 = vector.broadcast %61 : vector<1x256xf32> to vector<32x256xf32>
    %63 = arith.mulf %60, %62 : vector<32x256xf32>
    %64 = arith.truncf %63 : vector<32x256xf32> to vector<32x256xbf16>
    %c15_i32_12 = arith.constant 15 : i32
    %65 = tpu.dynamic_rotate %53 by %c15_i32_12 dim 1 : vector<32x256xf32>, i32 -> vector<32x256xf32>
    %66 = vector.extract_strided_slice %1 {offsets = [2, 0], sizes = [1, 256], strides = [1, 1]} : vector<9x256xf32> to vector<1x256xf32>
    %67 = vector.broadcast %66 : vector<1x256xf32> to vector<32x256xf32>
    %68 = arith.mulf %65, %67 : vector<32x256xf32>
    %69 = arith.truncf %68 : vector<32x256xf32> to vector<32x256xbf16>
    %c1_i32_13 = arith.constant 1 : i32
    %70 = tpu.dynamic_rotate %53 by %c1_i32_13 dim 1 : vector<32x256xf32>, i32 -> vector<32x256xf32>
    %71 = vector.extract_strided_slice %1 {offsets = [3, 0], sizes = [1, 256], strides = [1, 1]} : vector<9x256xf32> to vector<1x256xf32>
    %72 = vector.broadcast %71 : vector<1x256xf32> to vector<32x256xf32>
    %73 = arith.mulf %70, %72 : vector<32x256xf32>
    %74 = arith.truncf %73 : vector<32x256xf32> to vector<32x256xbf16>
    %75 = vector.extract_strided_slice %1 {offsets = [4, 0], sizes = [1, 256], strides = [1, 1]} : vector<9x256xf32> to vector<1x256xf32>
    %76 = vector.broadcast %75 : vector<1x256xf32> to vector<32x256xf32>
    %77 = arith.mulf %53, %76 : vector<32x256xf32>
    %78 = arith.truncf %77 : vector<32x256xf32> to vector<32x256xbf16>
    %c255_i32_14 = arith.constant 255 : i32
    %79 = tpu.dynamic_rotate %53 by %c255_i32_14 dim 1 : vector<32x256xf32>, i32 -> vector<32x256xf32>
    %80 = vector.extract_strided_slice %1 {offsets = [5, 0], sizes = [1, 256], strides = [1, 1]} : vector<9x256xf32> to vector<1x256xf32>
    %81 = vector.broadcast %80 : vector<1x256xf32> to vector<32x256xf32>
    %82 = arith.mulf %79, %81 : vector<32x256xf32>
    %83 = arith.truncf %82 : vector<32x256xf32> to vector<32x256xbf16>
    %c241_i32_15 = arith.constant 241 : i32
    %84 = tpu.dynamic_rotate %53 by %c241_i32_15 dim 1 : vector<32x256xf32>, i32 -> vector<32x256xf32>
    %85 = vector.extract_strided_slice %1 {offsets = [6, 0], sizes = [1, 256], strides = [1, 1]} : vector<9x256xf32> to vector<1x256xf32>
    %86 = vector.broadcast %85 : vector<1x256xf32> to vector<32x256xf32>
    %87 = arith.mulf %84, %86 : vector<32x256xf32>
    %88 = arith.truncf %87 : vector<32x256xf32> to vector<32x256xbf16>
    %c240_i32_16 = arith.constant 240 : i32
    %89 = tpu.dynamic_rotate %53 by %c240_i32_16 dim 1 : vector<32x256xf32>, i32 -> vector<32x256xf32>
    %90 = vector.extract_strided_slice %1 {offsets = [7, 0], sizes = [1, 256], strides = [1, 1]} : vector<9x256xf32> to vector<1x256xf32>
    %91 = vector.broadcast %90 : vector<1x256xf32> to vector<32x256xf32>
    %92 = arith.mulf %89, %91 : vector<32x256xf32>
    %93 = arith.truncf %92 : vector<32x256xf32> to vector<32x256xbf16>
    %c239_i32_17 = arith.constant 239 : i32
    %94 = tpu.dynamic_rotate %53 by %c239_i32_17 dim 1 : vector<32x256xf32>, i32 -> vector<32x256xf32>
    %95 = vector.extract_strided_slice %1 {offsets = [8, 0], sizes = [1, 256], strides = [1, 1]} : vector<9x256xf32> to vector<1x256xf32>
    %96 = vector.broadcast %95 : vector<1x256xf32> to vector<32x256xf32>
    %97 = arith.mulf %94, %96 : vector<32x256xf32>
    %98 = arith.truncf %97 : vector<32x256xf32> to vector<32x256xbf16>
    %99 = tpu.concatenate %59, %64, %69, %74, %78, %83, %88, %93, %98 in 0 : vector<32x256xbf16>, vector<32x256xbf16>, vector<32x256xbf16>, vector<32x256xbf16>, vector<32x256xbf16>, vector<32x256xbf16>, vector<32x256xbf16>, vector<32x256xbf16>, vector<32x256xbf16> -> vector<288x256xbf16>
    %cst_18 = arith.constant dense<0.000000e+00> : vector<32x256xf32>
    %100 = tpu.matmul %54, %99, %cst_18 {dimension_numbers = #tpu.dot_dimension_numbers<[1], [0], [0], [1], [0, 0, 1, 1], [], []>} : vector<32x288xbf16>, vector<288x256xbf16>, vector<32x256xf32> -> vector<32x256xf32>
    %c0_19 = arith.constant 0 : index
    %c0_20 = arith.constant 0 : index
    %101 = vector.load %arg7[%c0_19, %c0_20] : memref<32x256xf32, #tpu.memory_space<vmem>>, vector<32x256xf32>
    %102 = arith.addf %100, %101 : vector<32x256xf32>
    %cst_21 = arith.constant 0.000000e+00 : f32
    %103 = vector.broadcast %cst_21 : f32 to vector<32x256xf32>
    %104 = arith.maximumf %102, %103 : vector<32x256xf32>
    %c255_i32_22 = arith.constant 255 : i32
    %105 = tpu.dynamic_rotate %104 by %c255_i32_22 dim 1 : vector<32x256xf32>, i32 -> vector<32x256xf32>
    %106 = arith.maximumf %104, %105 : vector<32x256xf32>
    %c240_i32_23 = arith.constant 240 : i32
    %107 = tpu.dynamic_rotate %104 by %c240_i32_23 dim 1 : vector<32x256xf32>, i32 -> vector<32x256xf32>
    %c239_i32_24 = arith.constant 239 : i32
    %108 = tpu.dynamic_rotate %104 by %c239_i32_24 dim 1 : vector<32x256xf32>, i32 -> vector<32x256xf32>
    %109 = arith.maximumf %107, %108 : vector<32x256xf32>
    %110 = arith.maximumf %106, %109 : vector<32x256xf32>
    %c0_25 = arith.constant 0 : index
    %c0_26 = arith.constant 0 : index
    %111 = vector.load %arg3[%c0_25, %c0_26] : memref<1x256xf32, #tpu.memory_space<vmem>>, vector<1x256xf32>
    %112 = vector.broadcast %111 : vector<1x256xf32> to vector<32x256xf32>
    %113 = arith.mulf %110, %112 : vector<32x256xf32>
    %cst_27 = arith.constant dense<0.000000e+00> : vector<32xf32>
    %114 = vector.multi_reduction <add>, %113, %cst_27 [1] : vector<32x256xf32> to vector<32xf32>
    %115 = vector.shape_cast %114 : vector<32xf32> to vector<32x1xf32>
    %c0_28 = arith.constant 0 : index
    %c0_29 = arith.constant 0 : index
    %c0_30 = arith.constant 0 : index
    %116 = vector.load %arg8[%c0_28, %c0_29, %c0_30] : memref<1x32x1xf32, #tpu.memory_space<vmem>>, vector<1x32x1xf32>
    %117 = vector.shape_cast %116 : vector<1x32x1xf32> to vector<32x1xf32>
    %118 = vector.shape_cast %115 : vector<32x1xf32> to vector<1x32x1xf32>
    tpu.vector_store %arg8[%c0_28, %c0_29, %c0_30], %118 {strides = array<i32>} : memref<1x32x1xf32, #tpu.memory_space<vmem>>, vector<1x32x1xf32>,
    return
  }
  func.func @transform_0(%arg0: i32) -> (i32, i32) {
    %c0_i32 = arith.constant 0 : i32
    %c0_i32_0 = arith.constant 0 : i32
    return %c0_i32, %arg0 : i32, i32
  }
  func.func @transform_1(%arg0: i32) -> (i32, i32) {
    %c0_i32 = arith.constant 0 : i32
    %c0_i32_0 = arith.constant 0 : i32
    %c0_i32_1 = arith.constant 0 : i32
    return %c0_i32, %c0_i32_0 : i32, i32
  }
  func.func @transform_2(%arg0: i32) -> (i32, i32) {
    %c0_i32 = arith.constant 0 : i32
    %c0_i32_0 = arith.constant 0 : i32
    %c0_i32_1 = arith.constant 0 : i32
    return %c0_i32, %c0_i32_0 : i32, i32
  }
  func.func @transform_3(%arg0: i32) -> (i32, i32) {
    %c0_i32 = arith.constant 0 : i32
    %c0_i32_0 = arith.constant 0 : i32
    %c0_i32_1 = arith.constant 0 : i32
    return %c0_i32, %c0_i32_0 : i32, i32
  }
  func.func @transform_4(%arg0: i32) -> (i32, i32) {
    %c0_i32 = arith.constant 0 : i32
    %c0_i32_0 = arith.constant 0 : i32
    %c0_i32_1 = arith.constant 0 : i32
    return %c0_i32, %c0_i32_0 : i32, i32
  }
  func.func @transform_5(%arg0: i32) -> (i32, i32) {
    %c0_i32 = arith.constant 0 : i32
    %c0_i32_0 = arith.constant 0 : i32
    %c0_i32_1 = arith.constant 0 : i32
    return %c0_i32, %c0_i32_0 : i32, i32
  }
  func.func @transform_6(%arg0: i32) -> (i32, i32) {
    %c0_i32 = arith.constant 0 : i32
    %c0_i32_0 = arith.constant 0 : i32
    %c0_i32_1 = arith.constant 0 : i32
    return %c0_i32, %c0_i32_0 : i32, i32
  }
  func.func @transform_7(%arg0: i32) -> (i32, i32, i32) {
    %c0_i32 = arith.constant 0 : i32
    %c0_i32_0 = arith.constant 0 : i32
    %c0_i32_1 = arith.constant 0 : i32
    return %arg0, %c0_i32, %c0_i32_0 : i32, i32, i32
  }
}

</mosaic_0001>

<bundles_post_ra>
// kernel: tpu_custom_call.1
= control target key start
LH: loop header
LB: loop body
LE: loop exit
PB: predicated region body
PF: predicated region fallthrough
CT: control target
= control target key end

     0   :  { %12 = vsyncpa [#allocation3], 0  ;;  %s2934_s0 = inlined_call_operand.hbm [shape: f32[4,512], index: 0, kind: input, shape index: {}]   ;;  %s2935_s1 = inlined_call_operand.hbm [shape: bf16[9,256], index: 1, kind: input, shape index: {}]   ;;  %s2936_s2 = inlined_call_operand.vmem [shape: f32[1,256], index: 2, kind: input, shape index: {}]   ;;  %s2937_s3 = inlined_call_operand.hbm [shape: bf16[32,36], index: 3, kind: input, shape index: {}]   ;;  %s2938_s4 = inlined_call_operand.hbm [shape: f32[32,256], index: 4, kind: input, shape index: {}]   ;;  %s2939_s5 = inlined_call_operand.hbm [shape: bf16[32,288], index: 5, kind: input, shape index: {}]   ;;  %s2940_s6 = inlined_call_operand.hbm [shape: f32[32,256], index: 6, kind: input, shape index: {}]   ;;  %s2941_s7 = inlined_call_operand.vmem [shape: f32[2,32,1], index: 7, kind: output, shape index: {}]  }
   0x1   :  { %14 = vsyncpa [#allocation3 + $0x1], 0 }
   0x2   :  { %15 = vsyncpa [#allocation5], 0 }
   0x3   :  { %16 = vsyncpa [#allocation8], 0 }
   0x4   :  { %17 = vsyncpa [#allocation11], 0  ;;  %s1876_s24 = smov 0   ;;  %s1878_s25 = smov 0  }
   0x5   :  { %s1880_s26 = smov 0   ;;  %s1882_s27 = smov 0  }
   0x6 LB: > { %s1813_s28 = smov [#allocation4]   ;;  %s1897_s30 = sadd.s32 4294967295, %s1811_s27   ;;  %s1811_s27 = sphi %s1882_s27, %s2988_s27   ;;  %s1807_s26 = sphi %s1880_s26, %s2987_s26   ;;  %s1803_s25 = sphi %s1878_s25, %s2986_s25   ;;  %s1799_s24 = sphi %s1876_s24, %s2985_s24  }
   0x7   : > { %s218_s29 = sshll.u32 %s1813_s28, 4  ;;  %p1425_p0 = scmp.ge.s32.totalorder %s1811_s27, 1  ;;  %s1902_s29 = int_to_ptr.vmem [resolvable:$true] %s218_s29 }
   0x8   : > { %p2942_p1 = scmp.eq.s32.totalorder %s1897_s30, 0  ;;  %p206_p2 = scmp.lt.s32.totalorder %s1811_s27, 3 }
   0x9   : > { %s1814_s9 = smov [#allocation7]   ;;  %s1815_s12 = smov [#allocation6]  }
   0xa   : > { %p1904_p3 = pnand %p1425_p0, %p206_p2  ;;  %s247_s10 = sshll.u32 %s1814_s9, 4  ;;  %s1916_s10 = int_to_ptr.vmem [resolvable:$true] %s247_s10 }
   0xb   : > { %s1918_s13 = sshll.u32 %s1815_s12, 4  ;;  %s1595_s16 = scalar_lea.hbm %s2935_s1, 256  ;;  %s235_s13 = int_to_ptr.vmem [resolvable:$true] %s1918_s13 }
   0xc   : > { %s2953_s8 = scalar_select %p1904_p3, 1, 0 }
   0xd   : > { %p1499_p4 = pneg %p1904_p3  ;;  %p1596_p6 = scmp.ne.s32.totalorder %s2935_s1, %s1595_s16 }
   0xe   : > { %p1602_p10 = scmp.lt.u32.totalorder %s1595_s16, %s2935_s1 }
   0xf   : > { %p1912_p5 = pnand %p1499_p4, %p2942_p1 }
  0x11   : > { %p1928_p7 = pneg %p1912_p5 }
  0x13   : > { %p1598_p8 = pnand %p1928_p7, %p1596_p6 }
  0x15   : > { %p1599_p9 = pneg %p1598_p8 }
  0x17   : > { %p1604_p11 = pnand %p1602_p10, %p1599_p9 }
  0x19   : > { %1607 = shalt.err (!%p1604_p11)
}
  0x1a   : > { %s1608_s22 = scalar_lea.vmem %s1902_s29, 256  ;;  %p1616_p2 = scmp.lt.s32.totalorder %s1902_s29, %s1902_s29 }
  0x1b   : > { %p1609_p12 = scmp.ne.s32.totalorder %s1902_s29, %s1608_s22  ;;  %p1617_p4 = scmp.lt.s32.totalorder %s1608_s22, %s1608_s22 }
  0x1d   : > { %p1611_p13 = pnand %p1609_p12, %p1928_p7  ;;  %p1618_p6 = por %p1617_p4, %p1616_p2 }
  0x1f   : > { %p1612_p0 = pneg %p1611_p13 }
  0x21   : > { %p1619_p8 = pnand %p1618_p6, %p1612_p0 }
  0x23   : > { %1622 = shalt.err (!%p1619_p8)
}
  0x24   : > { %s1816_s23 = smov 128   ;;  %s1817_s28 = smov 8  }
  0x25   : > { %1502 = dma.hbm_to_vmem [thread:$0]  (!%p1912_p5), %s2935_s1, 256, %s1902_s29, [#allocation5], %s1816_s23, %s1816_s23, %s1817_s28  }
  0x26   : > { %s1623_s16 = scalar_lea.hbm %s2938_s4, 1024 }
  0x27   : > { %p1624_p9 = scmp.ne.s32.totalorder %s2938_s4, %s1623_s16  ;;  %p1630_p12 = scmp.lt.u32.totalorder %s1623_s16, %s2938_s4 }
  0x29   : > { %p1626_p10 = pnand %p1624_p9, %p1928_p7 }
  0x2b   : > { %p1627_p11 = pneg %p1626_p10 }
  0x2d   : > { %p1632_p13 = pnand %p1630_p12, %p1627_p11 }
  0x2f   : > { %1635 = shalt.err (!%p1632_p13)
}
  0x30   : > { %s1636_s29 = scalar_lea.vmem %s1916_s10, 1024  ;;  %p1644_p6 = scmp.lt.s32.totalorder %s1916_s10, %s1916_s10 }
  0x31   : > { %p1637_p0 = scmp.ne.s32.totalorder %s1916_s10, %s1636_s29  ;;  %p1645_p8 = scmp.lt.s32.totalorder %s1636_s29, %s1636_s29 }
  0x33   : > { %p1639_p2 = pnand %p1637_p0, %p1928_p7  ;;  %p1646_p9 = por %p1645_p8, %p1644_p6 }
  0x35   : > { %p1640_p4 = pneg %p1639_p2 }
  0x37   : > { %p1647_p10 = pnand %p1646_p9, %p1640_p4 }
  0x39   : > { %1650 = shalt.err (!%p1647_p10)
}
  0x3a   : > { %s2944_s22 = smov 256   ;;  %s1819_s23 = smov 16  }
  0x3b   : > { %1508 = dma.hbm_to_vmem [thread:$0]  (!%p1912_p5), %s2938_s4, 1024, %s1916_s10, [#allocation8], %s2944_s22, %s2944_s22, %s1819_s23  }
  0x3c   : > { %s1651_s15 = scalar_lea.hbm %s2937_s3, 256 }
  0x3d   : > { %p1652_p11 = scmp.ne.s32.totalorder %s2937_s3, %s1651_s15  ;;  %p1658_p0 = scmp.lt.u32.totalorder %s1651_s15, %s2937_s3 }
  0x3f   : > { %p1654_p12 = pnand %p1652_p11, %p1928_p7 }
  0x41   : > { %p1655_p13 = pneg %p1654_p12 }
  0x43   : > { %p1660_p2 = pnand %p1658_p0, %p1655_p13 }
  0x45   : > { %1663 = shalt.err (!%p1660_p2)
}
  0x46   : > { %s1664_s21 = scalar_lea.vmem %s235_s13, 256  ;;  %p1672_p9 = scmp.lt.s32.totalorder %s235_s13, %s235_s13 }
  0x47   : > { %p1665_p4 = scmp.ne.s32.totalorder %s235_s13, %s1664_s21  ;;  %p1673_p10 = scmp.lt.s32.totalorder %s1664_s21, %s1664_s21 }
  0x49   : > { %p1667_p6 = pnand %p1665_p4, %p1928_p7  ;;  %p1674_p1 = por %p1673_p10, %p1672_p9 }
  0x4b   : > { %p1668_p8 = pneg %p1667_p6 }
  0x4d   : > { %p1675_p3 = pnand %p1674_p1, %p1668_p8 }
  0x4f   : > { %1678 = shalt.err (!%p1675_p3)
}
  0x50   : > { %s1820_s10 = smov 64   ;;  %s1821_s29 = smov 4  }
  0x51   : > { %1505 = dma.hbm_to_vmem [thread:$0]  (!%p1912_p5), %s2937_s3, 256, %s235_s13, [#allocation5], %s1820_s10, %s1820_s10, %s1821_s29  }
  0x52   : > { %s1822_s12 = smov [#allocation9]   ;;  %s1679_s17 = scalar_lea.hbm %s2939_s5, 768 }
  0x53   : > { %s260_s14 = sshll.u32 %s1822_s12, 4  ;;  %p1680_p1 = scmp.ne.s32.totalorder %s2939_s5, %s1679_s17  ;;  %s261_s14 = int_to_ptr.vmem [resolvable:$true] %s260_s14 }
  0x54   : > { %p1686_p12 = scmp.lt.u32.totalorder %s1679_s17, %s2939_s5 }
  0x55   : > { %p1682_p3 = pnand %p1680_p1, %p1928_p7 }
  0x57   : > { %p1683_p11 = pneg %p1682_p3 }
  0x59   : > { %p1688_p13 = pnand %p1686_p12, %p1683_p11 }
  0x5b   : > { %1691 = shalt.err (!%p1688_p13)
}
  0x5c   : > { %s1692_s13 = scalar_lea.vmem %s261_s14, 768  ;;  %p1700_p6 = scmp.lt.s32.totalorder %s261_s14, %s261_s14 }
  0x5d   : > { %p1693_p0 = scmp.ne.s32.totalorder %s261_s14, %s1692_s13  ;;  %p1701_p8 = scmp.lt.s32.totalorder %s1692_s13, %s1692_s13 }
  0x5f   : > { %p1695_p2 = pnand %p1693_p0, %p1928_p7  ;;  %p1702_p9 = por %p1701_p8, %p1700_p6 }
  0x61   : > { %p1696_p4 = pneg %p1695_p2 }
  0x63   : > { %p1703_p10 = pnand %p1702_p9, %p1696_p4 }
  0x65   : > { %1706 = shalt.err (!%p1703_p10)
}
  0x66   : > { %s1823_s10 = smov 192   ;;  %s1824_s29 = smov 12  }
  0x67   : > { %1511 = dma.hbm_to_vmem [thread:$0]  (!%p1912_p5), %s2939_s5, 768, %s261_s14, [#allocation8], %s1823_s10, %s1823_s10, %s1824_s29  }
  0x68   : > { %s1825_s9 = smov [#allocation10]   ;;  %s1707_s17 = scalar_lea.hbm %s2940_s6, 1024 }
  0x69   : > { %s273_s12 = sshll.u32 %s1825_s9, 4  ;;  %p1708_p1 = scmp.ne.s32.totalorder %s2940_s6, %s1707_s17  ;;  %s274_s12 = int_to_ptr.vmem [resolvable:$true] %s273_s12 }
  0x6a   : > { %p1714_p12 = scmp.lt.u32.totalorder %s1707_s17, %s2940_s6 }
  0x6b   : > { %p1710_p3 = pnand %p1708_p1, %p1928_p7 }
  0x6d   : > { %p1711_p11 = pneg %p1710_p3 }
  0x6f   : > { %p1716_p13 = pnand %p1714_p12, %p1711_p11 }
  0x71   : > { %1719 = shalt.err (!%p1716_p13)
}
  0x72   : > { %s1720_s14 = scalar_lea.vmem %s274_s12, 1024  ;;  %p1728_p6 = scmp.lt.s32.totalorder %s274_s12, %s274_s12 }
  0x73   : > { %p1721_p0 = scmp.ne.s32.totalorder %s274_s12, %s1720_s14  ;;  %p1729_p8 = scmp.lt.s32.totalorder %s1720_s14, %s1720_s14 }
  0x75   : > { %p1723_p2 = pnand %p1721_p0, %p1928_p7  ;;  %p1730_p9 = por %p1729_p8, %p1728_p6 }
  0x77   : > { %p1724_p4 = pneg %p1723_p2 }
  0x79   : > { %p1731_p10 = pnand %p1730_p9, %p1724_p4 }
  0x7b   : > { %1734 = shalt.err (!%p1731_p10)
}
  0x7c   : > { %s2956_s10 = smov 256   ;;  %s2034_s11 = sadd.s32 1, %s1811_s27  }
  0x7d   : > { %1514 = dma.hbm_to_vmem [thread:$0]  (!%p1912_p5), %s2940_s6, 1024, %s274_s12, [#allocation11], %s2956_s10, %s2956_s10, %s1819_s23  }
  0x7e   : > { %s27_s19 = ssub.s32 %s1811_s27, %s2034_s11  ;;  %s30_s28 = sadd.s32 1, %s1807_s26 }
  0x7f   : > { %p28_p7 = scmp.eq.s32.totalorder %s27_s19, 0  ;;  %p37_p1 = scmp.ne.s32.totalorder %s1807_s26, %s1803_s25 }
  0x80   : > { %p38_p3 = scmp.eq.s32.totalorder %s1811_s27, 0  ;;  %p43_p11 = scmp.ne.s32.totalorder %s1803_s25, %s1799_s24 }
  0x81   : > { %s2045_s9 = scalar_select %p28_p7, %s1807_s26, %s30_s28  }
  0x82   : > { %p39_p12 = por %p38_p3, %p37_p1  ;;  %p2957_p13 = scmp.eq.s32.totalorder %s1897_s30, 0 }
  0x83   : > { %p1524_p2 = scmp.lt.s32.totalorder %s1811_s27, 2  ;;  %s287_s16 = sand.u32 1, %s1807_s26  }
  0x84   : > { %p2049_p0 = por %p2957_p13, %p43_p11  ;;  %s1432_s23 = sshll.u32 %s287_s16, 3 }
  0x85   : > { %s1459_s12 = sshll.u32 %s1811_s27, 7  ;;  %s291_s24 = scalar_lea.vmem [#allocation2], %s1432_s23 }
  0x86   : > { %s2059_s20 = scalar_lea.hbm %s2934_s0, %s1459_s12  ;;  %s299_s21 = sshll.u32 %s291_s24, 4  ;;  %s2061_s21 = int_to_ptr.vmem [resolvable:$true] %s299_s21 }
  0x87   : > { %p2063_p5 = pnand %p1524_p2, %p39_p12  ;;  %s288_s27 = scalar_lea.sflag [#allocation3], %s287_s16 }
  0x88   : > { %s1735_s14 = scalar_lea.hbm %s2059_s20, 128  ;;  %s1740_s22 = scalar_lea.hbm %s2934_s0, 256 }
  0x89   : > { %p1736_p4 = scmp.ne.s32.totalorder %s2059_s20, %s1735_s14  ;;  %p1737_p6 = pneg %p2063_p5 }
  0x8a   : > { %p1741_p10 = scmp.lt.u32.totalorder %s2059_s20, %s2934_s0  ;;  %p1742_p7 = scmp.lt.u32.totalorder %s1740_s22, %s1735_s14 }
  0x8b   : > { %p1738_p8 = pnand %p1737_p6, %p1736_p4  ;;  %p1744_p3 = scmp.lt.u32.totalorder %s1735_s14, %s2059_s20 }
  0x8c   : > { %p1743_p1 = por %p1742_p7, %p1741_p10 }
  0x8d   : > { %p1739_p9 = pneg %p1738_p8 }
  0x8e   : > { %p1745_p11 = por %p1744_p3, %p1743_p1 }
  0x90   : > { %p1746_p12 = pnand %p1745_p11, %p1739_p9 }
  0x92   : > { %1749 = shalt.err (!%p1746_p12)
}
  0x93   : > { %s1750_s16 = scalar_lea.vmem %s2061_s21, 128  ;;  %s1826_s23 = smov [#allocation2]  }
  0x94   : > { %p1751_p13 = scmp.ne.s32.totalorder %s2061_s21, %s1750_s16  ;;  %s1755_s12 = sshll.u32 %s1826_s23, 4  ;;  %s1756_s12 = int_to_ptr.vmem [resolvable:$false] %s1755_s12 }
  0x95   : > { %s1757_s17 = scalar_lea.vmem %s1756_s12, 256  ;;  %p1758_p8 = scmp.lt.s32.totalorder %s2061_s21, %s1756_s12 }
  0x96   : > { %p1753_p2 = pnand %p1751_p13, %p1737_p6  ;;  %p1759_p10 = scmp.lt.s32.totalorder %s1757_s17, %s1750_s16 }
  0x98   : > { %p1754_p4 = pneg %p1753_p2  ;;  %p1760_p7 = por %p1759_p10, %p1758_p8 }
  0x9a   : > { %p1761_p1 = pnand %p1760_p7, %p1754_p4 }
  0x9c   : > { %1764 = shalt.err (!%p1761_p1)
}
  0x9d   : > { %1518 = dma.hbm_to_vmem [thread:$0]  (!%p2063_p5), %s2059_s20, 128, %s2061_s21, %s288_s27  }
  0x9e   : > { %p2960_p9 = scmp.ne.s32.totalorder %s2953_s8, 0 }
  0xa0   : > { %308 = sbr.rel (%p2960_p9) target bundleno = 1334 (0x536), region = 48 }
  0xa7   : > { %s310_s18 = sand.u32 1, %s1803_s25  }
  0xa8   : > { %s1436_s24 = sshll.u32 %s310_s18, 3  ;;  %s311_s14 = scalar_lea.sflag [#allocation3], %s310_s18 }
  0xa9   : > { %s314_s10 = scalar_lea.vmem [#allocation2], %s1436_s24 }
  0xaa   : > { %1782 = dma.done.wait (%p2049_p0), %s311_s14, 128  }
  0xab   : > { %1784 = vsyncadd (%p2049_p0), %s311_s14, 4294967168  ;;  %p2961_p6 = scmp.eq.s32.totalorder %s1897_s30, 0 }
  0xad   : > { %1786 = dma.done.wait (%p2961_p6), [#allocation5], 512   ;;  %p2962_p3 = pmov %p2961_p6 }
  0xaf   : > { %1788 = vsyncadd (%p2962_p3), [#allocation5], 4294966784  ;;  %p2963_p5 = pmov %p2962_p3 }
  0xb0   : > { %p2964_p11 = pmov %p2962_p3 }
  0xb1   : > { %1790 = dma.done.wait (%p2963_p5), [#allocation8], 1792  }
  0xb2   : > { %1792 = vsyncadd (%p2964_p11), [#allocation8], 4294965504  ;;  %p2965_p12 = pmov %p2962_p3 }
  0xb3   : > { %p2966_p13 = pmov %p2962_p3 }
  0xb4   : > { %1794 = dma.done.wait (%p2965_p12), [#allocation11], 1024  }
  0xb5   : > { %1796 = vsyncadd (%p2966_p13), [#allocation11], 4294966272  ;;  %v2111_v0 = vld [vmem:[%s314_s10] sm:$0xff]  ;;  %s1827_s8 = smov 15   ;;  %s1828_s15 = smov 16   ;;  %v2945_v2 = vmov 0   ;;  %v390_v3 = vlaneseq }
  0xb6   : > { %426 = vrot.lane.b32.xlu1 %v2111_v0, %s1827_s8  ;;  %407 = vrot.lane.b32.xlu0 %v2111_v0, %s1828_s15  ;;  %v384_v1 = vcombine.high %v2111_v0, %v2111_v0  ;;  %s1829_s20 = smov 17   ;;  %s1830_s21 = smov 1   ;;  %v372_v5 = vld [vmem:[#allocation4] sm:$0xff]  ;;  %vm582_vm5 = vcmask 1041408   ;;  %vm589_vm7 = vcmask 1043456   ;;  %vm594_vm8 = vcmask 1045504  }
  0xb7   : > { %s1831_s13 = smov 127   ;;  %s1832_s27 = smov 113   ;;  %680 = vmatprep.mubr.bf16.mxu0 %v2945_v2  ;;  %v2140_v4 = vshrl.u32 %v390_v3, 7  ;;  %v2142_v6 = vand.u32 127, %v390_v3  ;;  %v2145_v10 = vunpack.c.h.bf16 %v372_v5  ;;  %v2148_v12 = vunpack.c.l.bf16 %v372_v5 }
  0xb8   : > { %s1833_s29 = smov 112   ;;  %s1835_s22 = smov 111   ;;  %vm635_vm11 = vcmask 293888   ;;  %vm1055_vm12 = vcmask 261120   ;;  %vm1304_vm13 = vcmask 7168  }
  0xb9   : > { %v435_v9 = vsub.s32 2, %v2140_v4  ;;  %v466_v11 = vsub.s32 4, %v2140_v4  ;;  %v2151_v13 = vsub.s32 0, %v2140_v4  ;;  %vm430_vm0 = vcmp.lt.s32.totalorder %v2142_v6, 15  ;;  %p366_p0 = scmp.lt.s32.totalorder %s1897_s30, 1 }
  0xba   : > { %386 = vrot.lane.b32.xlu0 %v2111_v0, %s1829_s20  ;;  %428 = vrot.lane.b32.xlu1 %v384_v1, %s1827_s8  ;;  %v2155_v14 = vsub.s32 1, %v2140_v4  ;;  %v454_v15 = vsub.s32 3, %v2140_v4  ;;  %vm392_vm1 = vcmp.lt.s32.totalorder %v2142_v6, 17  ;;  %vm411_vm2 = vcmp.lt.s32.totalorder %v2142_v6, 16 }
  0xbb   : > { %2967 = vst [vmem:[#allocation16_spill] sm:$0xff] %v2151_v13  ;;  %v491_v16 = vsub.s32 5, %v2140_v4  ;;  %v2162_v19 = vrot.slane %v2145_v10, %v435_v9  ;;  %vm449_vm3 = vcmp.lt.s32.totalorder %v2142_v6, 1  ;;  %v2166_v20 = vrot.slane %v2148_v12, %v466_v11  ;;  %s2990_s30 = smov (!%p366_p0, %s1897_s30), 1 }
  0xbc   : > { %2968 = vst [vmem:[#allocation17_spill] sm:$0xff] %v2155_v14  ;;  %v2169_v21 = vrot.slane %v2145_v10, %v466_v11  ;;  %v2174_v23 = vrot.slane %v2148_v12, %v435_v9  ;;  %v2178_v24 = vrot.slane %v2148_v12, %v2151_v13  ;;  %v2182_v25 = vrot.slane %v2145_v10, %v2151_v13  ;;  %s1460_s16 = sshll.u32 %s2990_s30, 5 }
  0xbd   : > { %v2186_v26 = vrot.slane %v2148_v12, %v2155_v14  ;;  %v2190_v27 = vrot.slane %v2145_v10, %v2155_v14  ;;  %v2193_v28 = vrot.slane %v2148_v12, %v454_v15  ;;  %v2196_v29 = vrot.slane %v2145_v10, %v454_v15  ;;  %s370_s17 = scalar_lea.vmem %s2941_s7, %s1460_s16 }
  0xbe   : > { %388 = vrot.lane.b32.xlu1 %v384_v1, %s1829_s20  ;;  %409 = vrot.lane.b32.xlu0 %v384_v1, %s1828_s15  ;;  %vm486_vm4 = vcmp.lt.s32.totalorder %v2142_v6, 127  ;;  %v2202_v31 = vrot.slane %v2148_v12, %v491_v16  ;;  %v2205_v32 = vrot.slane %v2145_v10, %v491_v16  ;;  %v510_v36 = vsub.s32 6, %v2140_v4 }
  0xbf   : > { %v474_v37 = vcombine.low %v2166_v20, %v2169_v21  ;;  %vm505_vm6 = vcmp.lt.s32.totalorder %v2142_v6, 113  ;;  %v529_v60 = vsub.s32 7, %v2140_v4  ;;  %vm524_vm9 = vcmp.lt.s32.totalorder %v2142_v6, 112 }
  0xc0   : > { %v2226_v50 = vrot.slane %v2148_v12, %v510_v36  ;;  %v2229_v51 = vrot.slane %v2145_v10, %v510_v36  ;;  %v373_v36 = vld [vmem:[#allocation4 + $0x8] sm:$0x11]  ;;  %vm543_vm10 = vcmp.lt.s32.totalorder %v2142_v6, 111 }
  0xc1   : > { %v2232_v52 = vmul.f32 %v474_v37, %v2111_v0 }
  0xc2   : > { %447 = vrot.lane.b32.xlu1 %v384_v1, %s1830_s21  ;;  %445 = vrot.lane.b32.xlu0 %v2111_v0, %s1830_s21 }
  0xc3   : > { %v478_v9 = vcombine.high %v2232_v52, %v2232_v52 }
  0xc6   : > { %484 = vrot.lane.b32.xlu1 %v384_v1, %s1831_s13  ;;  %482 = vrot.lane.b32.xlu0 %v2111_v0, %s1831_s13 }
  0xca   : > { %503 = vrot.lane.b32.xlu1 %v384_v1, %s1832_s27  ;;  %501 = vrot.lane.b32.xlu0 %v2111_v0, %s1832_s27 }
  0xce   : > { %522 = vrot.lane.b32.xlu1 %v384_v1, %s1833_s29  ;;  %520 = vrot.lane.b32.xlu0 %v2111_v0, %s1833_s29 }
  0xd2   : > { %541 = vrot.lane.b32.xlu1 %v384_v1, %s1835_s22  ;;  %539 = vrot.lane.b32.xlu0 %v2111_v0, %s1835_s22 }
 0x128   : > { %v427_v7 = vpop.permute.xlu1 %426  ;;  %v408_v8 = vpop.permute.xlu0 %407 }
 0x12c   : > { %v387_v17 = vpop.permute.xlu0 %386  ;;  %v429_v18 = vpop.permute.xlu1 %428 }
 0x12d   : > { %v431_v22 = vsel %vm430_vm0, %v427_v7, %v429_v18  ;;  %v432_v30 = vsel %vm430_vm0, %v429_v18, %v427_v7 }
 0x12e   : > { %v442_v33 = vmul.f32 %v2162_v19, %v431_v22  ;;  %v441_v42 = vmul.f32 %v2174_v23, %v432_v30 }
 0x130   : > { %v389_v34 = vpop.permute.xlu1 %388  ;;  %v410_v35 = vpop.permute.xlu0 %409  ;;  %v444_v47 = vpack.c.bf16 %v442_v33, %v442_v33  ;;  %v443_v57 = vpack.c.bf16 %v441_v42, %v441_v42  ;;  %v2259_v42 = vrot.slane %v2145_v10, %v529_v60  ;;  %v480_v10 = vpack.c.bf16 %v2232_v52, %v2232_v52 }
 0x131   : > { %v393_v38 = vsel %vm392_vm1, %v387_v17, %v389_v34  ;;  %v394_v39 = vsel %vm392_vm1, %v389_v34, %v387_v17  ;;  %v412_v40 = vsel %vm411_vm2, %v408_v8, %v410_v35  ;;  %v413_v41 = vsel %vm411_vm2, %v410_v35, %v408_v8 }
 0x132   : > { %v403_v43 = vmul.f32 %v2178_v24, %v394_v39  ;;  %v404_v44 = vmul.f32 %v2182_v25, %v393_v38  ;;  %v422_v45 = vmul.f32 %v2186_v26, %v413_v41  ;;  %v423_v46 = vmul.f32 %v2190_v27, %v412_v40  ;;  %2970 = vst [vmem:[#allocation19_spill] sm:$0xff] %v2259_v42 }
 0x133   : > { %v565_v1 = vrot.slane %v444_v47, 4  ;;  %v564_v17 = vrot.slane %v443_v57, 4  ;;  %v2254_v35 = vrot.slane %v2148_v12, %v529_v60  ;;  %v481_v57 = vpack.c.bf16 %v478_v9, %v478_v9 }
 0x134   : > { %v448_v48 = vpop.permute.xlu1 %447  ;;  %v446_v49 = vpop.permute.xlu0 %445  ;;  %v424_v53 = vpack.c.bf16 %v422_v45, %v422_v45  ;;  %v425_v54 = vpack.c.bf16 %v423_v46, %v423_v46  ;;  %v405_v61 = vpack.c.bf16 %v403_v43, %v403_v43  ;;  %v406_v62 = vpack.c.bf16 %v404_v44, %v404_v44 }
 0x135   : > { %v450_v55 = vsel %vm449_vm3, %v446_v49, %v448_v48  ;;  %v451_v56 = vsel %vm449_vm3, %v448_v48, %v446_v49  ;;  %2969 = vst [vmem:[#allocation18_spill] sm:$0xff] %v2254_v35  ;;  %v376_v48 = vunpack.c.l.bf16 %v373_v36  ;;  %v377_v49 = vunpack.c.h.bf16 %v373_v36 }
 0x136   : > { %v460_v58 = vmul.f32 %v2193_v28, %v451_v56  ;;  %v461_v59 = vmul.f32 %v2196_v29, %v450_v55  ;;  %v560_v63 = vrot.slane %v424_v53, 6  ;;  %v561_v0 = vrot.slane %v425_v54, 6 }
 0x137   : > { %v2278_v52 = vrot.slane %v376_v48, %v2151_v13 }
 0x138   : > { %v462_v3 = vpack.c.bf16 %v460_v58, %v460_v58  ;;  %v485_v5 = vpop.permute.xlu1 %484  ;;  %v483_v7 = vpop.permute.xlu0 %482  ;;  %v463_v8 = vpack.c.bf16 %v461_v59, %v461_v59  ;;  %v588_v4 = vsel %vm582_vm5, %v406_v62, %v561_v0  ;;  %v585_v16 = vsel %vm582_vm5, %v405_v61, %v560_v63 }
 0x139   : > { %v487_v11 = vsel %vm486_vm4, %v483_v7, %v485_v5  ;;  %v488_v15 = vsel %vm486_vm4, %v485_v5, %v483_v7  ;;  %v593_v33 = vsel %vm589_vm7, %v588_v4, %v565_v1  ;;  %v591_v41 = vsel %vm589_vm7, %v585_v16, %v564_v17 }
 0x13a   : > { %v497_v18 = vmul.f32 %v2202_v31, %v487_v11  ;;  %v498_v22 = vmul.f32 %v2205_v32, %v488_v15  ;;  %v569_v30 = vrot.slane %v463_v8, 2  ;;  %v568_v34 = vrot.slane %v462_v3, 2 }
 0x13b   : > { %v2281_v0 = vrot.slane %v377_v49, %v2151_v13 }
 0x13c   : > { %v499_v37 = vpack.c.bf16 %v497_v18, %v497_v18  ;;  %v504_v38 = vpop.permute.xlu1 %503  ;;  %v502_v39 = vpop.permute.xlu0 %501  ;;  %v599_v40 = vsel %vm594_vm8, %v593_v33, %v569_v30  ;;  %v500_v43 = vpack.c.bf16 %v498_v22, %v498_v22  ;;  %v596_v12 = vsel %vm594_vm8, %v591_v41, %v568_v34  ;;  %v1585_v41 = vld [vmem:[#allocation6] sm:$0xff]  }
 0x13d   : > { %v506_v44 = vsel %vm505_vm6, %v502_v39, %v504_v38  ;;  %v507_v45 = vsel %vm505_vm6, %v504_v38, %v502_v39  ;;  %648 = vmatprep.subr.bf16.mxu0 %v599_v40 }
 0x13e   : > { %v516_v46 = vmul.f32 %v2226_v50, %v506_v44  ;;  %v517_v47 = vmul.f32 %v2229_v51, %v507_v45  ;;  %649 = vmatpush1.bf16.msra.mxu0 %v596_v12  ;;  %v572_v58 = vrot.slane %v499_v37, 6  ;;  %v573_v59 = vrot.slane %v500_v43, 6  ;;  %v1586_v43 = vld [vmem:[#allocation6 + $0x8] sm:$0xff]   ;;  %v617_v44 = vld [vmem:[#allocation7] sm:$0xff]  ;;  %v619_v12 = vld [vmem:[#allocation7 + $0x10] sm:$0xff] }
 0x140   : > { %v518_v53 = vpack.c.bf16 %v516_v46, %v516_v46  ;;  %v519_v54 = vpack.c.bf16 %v517_v47, %v517_v47  ;;  %v523_v55 = vpop.permute.xlu1 %522  ;;  %v521_v56 = vpop.permute.xlu0 %520  ;;  %v606_v4 = vsel %vm582_vm5, %v481_v57, %v573_v59  ;;  %v603_v16 = vsel %vm582_vm5, %v480_v10, %v572_v58  ;;  %v618_v59 = vld [vmem:[#allocation7 + $0x8] sm:$0xff] }
 0x141   : > { %v525_v60 = vsel %vm524_vm9, %v521_v56, %v523_v55  ;;  %v526_v61 = vsel %vm524_vm9, %v523_v55, %v521_v56 }
 0x142   : > { %v535_v62 = vmul.f32 %v2254_v35, %v525_v60  ;;  %v536_v63 = vmul.f32 %v2259_v42, %v526_v61  ;;  %v576_v1 = vrot.slane %v518_v53, 4  ;;  %v577_v3 = vrot.slane %v519_v54, 4  ;;  %v620_v60 = vld [vmem:[#allocation7 + $0x18] sm:$0xff] }
 0x144   : > { %v537_v5 = vpack.c.bf16 %v535_v62, %v535_v62  ;;  %v538_v7 = vpack.c.bf16 %v536_v63, %v536_v63  ;;  %v542_v8 = vpop.permute.xlu1 %541  ;;  %v540_v9 = vpop.permute.xlu0 %539  ;;  %v610_v33 = vsel %vm589_vm7, %v606_v4, %v577_v3  ;;  %v608_v34 = vsel %vm589_vm7, %v603_v16, %v576_v1  ;;  %v621_v3 = vld [vmem:[#allocation7 + $0x20] sm:$0xff]  ;;  %v624_v4 = vld [vmem:[#allocation7 + $0x38] sm:$0xff] }
 0x145   : > { %v544_v11 = vsel %vm543_vm10, %v540_v9, %v542_v8  ;;  %v545_v15 = vsel %vm543_vm10, %v542_v8, %v540_v9 }
 0x146   : > { %v580_v17 = vrot.slane %v537_v5, 2  ;;  %v581_v18 = vrot.slane %v538_v7, 2  ;;  %v554_v22 = vmul.f32 %v2278_v52, %v544_v11  ;;  %v555_v30 = vmul.f32 %v2281_v0, %v545_v15  ;;  %v623_v7 = vld [vmem:[#allocation7 + $0x30] sm:$0xff]  ;;  %v622_v15 = vld [vmem:[#allocation7 + $0x28] sm:$0xff] }
 0x148   : > { %v556_v36 = vpack.c.bf16 %v554_v22, %v554_v22  ;;  %v557_v37 = vpack.c.bf16 %v555_v30, %v555_v30  ;;  %v615_v38 = vsel %vm594_vm8, %v610_v33, %v581_v18  ;;  %v612_v39 = vsel %vm594_vm8, %v608_v34, %v580_v17  ;;  %v1589_v34 = vld [vmem:[#allocation9 + $0x4] ss:$12 sps:$4 sm:$0xff]  }
 0x149   : > { %650 = vmatprep.subr.bf16.mxu0 %v615_v38  ;;  %1094 = vmatprep.mubr.bf16.mxu1 %v1589_v34 }
 0x14a   : > { %651 = vmatpush1.bf16.msra.mxu0 %v612_v39  ;;  %v643_v40 = vsel %vm582_vm5, %v556_v36, 0 }
 0x14b   : > { %1446 = vmatprep.subr.msk.bf16.mxu0 %vm582_vm5, %v557_v37 }
 0x14e   : > { %653 = vmatpush1.bf16.msra.mxu0 %v643_v40 }
 0x151   : > { %1447 = vmatmul.mubr.msk.bf16.vlgmr.msra.gmra.mrb[0].mxu0 %vm635_vm11, %v1585_v41 }
 0x152   : > { %690 = vmatprep.mubr.bf16.mxu0 %v2945_v2 }
 0x159   : > { %1448 = vmatmul.mubr.msk.bf16.gmra.mrb[4].mxu0 %vm635_vm11, %v1586_v43 }
 0x15a   : > { %1147 = vmatprep.mubr.bf16.mxu0 %v2945_v2 }
 0x224   : > { %v682_v45 = vpop.f32.mrb[0].mxu0 }
 0x225   : > { %v683_v46 = vadd.f32 %v682_v45, %v617_v44  ;;  %v684_v47 = vpop.f32.mrb[1].mxu0 }
 0x226   : > { %v686_v48 = vpop.f32.mrb[2].mxu0  ;;  %v685_v61 = vadd.f32 %v684_v47, %v618_v59 }
 0x227   : > { %v2299_v49 = vmax.f32 %v683_v46, 0.0  ;;  %v687_v10 = vadd.f32 %v686_v48, %v619_v12  ;;  %v688_v53 = vpop.f32.mrb[3].mxu0 }
 0x228   : > { %v689_v62 = vadd.f32 %v688_v53, %v620_v60  ;;  %v2325_v63 = vmax.f32 %v685_v61, 0.0 }
 0x229   : > { %v2301_v54 = vmax.f32 %v687_v10, 0.0  ;;  %717 = vrot.lane.b32.xlu0 %v2299_v49, %s1829_s20 }
 0x22a   : > { %v2329_v1 = vmax.f32 %v689_v62, 0.0 }
 0x22b   : > { %719 = vrot.lane.b32.xlu1 %v2301_v54, %s1829_s20 }
 0x22c   : > { %v692_v55 = vpop.f32.mrb[4].mxu0 }
 0x22d   : > { %753 = vrot.lane.b32.xlu0 %v2299_v49, %s1828_s15  ;;  %v694_v56 = vpop.f32.mrb[5].mxu0  ;;  %v693_v5 = vadd.f32 %v692_v55, %v621_v3 }
 0x22e   : > { %v696_v57 = vpop.f32.mrb[6].mxu0  ;;  %v695_v16 = vadd.f32 %v694_v56, %v622_v15 }
 0x22f   : > { %755 = vrot.lane.b32.xlu1 %v2301_v54, %s1828_s15  ;;  %v698_v58 = vpop.f32.mrb[7].mxu0  ;;  %v2347_v8 = vmax.f32 %v693_v5, 0.0  ;;  %v697_v9 = vadd.f32 %v696_v57, %v623_v7 }
 0x230   : > { %v699_v17 = vadd.f32 %v698_v58, %v624_v4  ;;  %v2373_v18 = vmax.f32 %v695_v16, 0.0 }
 0x231   : > { %789 = vrot.lane.b32.xlu0 %v2299_v49, %s1827_s8  ;;  %v2353_v11 = vmax.f32 %v697_v9, 0.0 }
 0x232   : > { %v2377_v22 = vmax.f32 %v699_v17, 0.0 }
 0x233   : > { %791 = vrot.lane.b32.xlu1 %v2301_v54, %s1827_s8 }
 0x235   : > { %825 = vrot.lane.b32.xlu0 %v2299_v49, %s1830_s21 }
 0x237   : > { %827 = vrot.lane.b32.xlu1 %v2301_v54, %s1830_s21 }
 0x239   : > { %873 = vrot.lane.b32.xlu0 %v2299_v49, %s1831_s13 }
 0x23b   : > { %875 = vrot.lane.b32.xlu1 %v2301_v54, %s1831_s13 }
 0x23d   : > { %909 = vrot.lane.b32.xlu0 %v2299_v49, %s1832_s27 }
 0x23f   : > { %911 = vrot.lane.b32.xlu1 %v2301_v54, %s1832_s27 }
 0x241   : > { %725 = vrot.lane.b32.xlu0 %v2325_v63, %s1829_s20 }
 0x243   : > { %727 = vrot.lane.b32.xlu1 %v2329_v1, %s1829_s20 }
 0x245   : > { %761 = vrot.lane.b32.xlu0 %v2325_v63, %s1828_s15 }
 0x247   : > { %763 = vrot.lane.b32.xlu1 %v2329_v1, %s1828_s15 }
 0x249   : > { %797 = vrot.lane.b32.xlu0 %v2325_v63, %s1827_s8 }
 0x24b   : > { %799 = vrot.lane.b32.xlu1 %v2329_v1, %s1827_s8 }
 0x24d   : > { %833 = vrot.lane.b32.xlu0 %v2325_v63, %s1830_s21 }
 0x24f   : > { %835 = vrot.lane.b32.xlu1 %v2329_v1, %s1830_s21 }
 0x251   : > { %881 = vrot.lane.b32.xlu0 %v2325_v63, %s1831_s13 }
 0x253   : > { %883 = vrot.lane.b32.xlu1 %v2329_v1, %s1831_s13 }
 0x255   : > { %721 = vrot.lane.b32.xlu0 %v2347_v8, %s1829_s20 }
 0x257   : > { %723 = vrot.lane.b32.xlu1 %v2353_v11, %s1829_s20 }
 0x259   : > { %757 = vrot.lane.b32.xlu0 %v2347_v8, %s1828_s15 }
 0x25b   : > { %759 = vrot.lane.b32.xlu1 %v2353_v11, %s1828_s15 }
 0x25d   : > { %793 = vrot.lane.b32.xlu0 %v2347_v8, %s1827_s8 }
 0x25f   : > { %795 = vrot.lane.b32.xlu1 %v2353_v11, %s1827_s8 }
 0x261   : > { %829 = vrot.lane.b32.xlu0 %v2347_v8, %s1830_s21 }
 0x263   : > { %831 = vrot.lane.b32.xlu1 %v2353_v11, %s1830_s21 }
 0x265   : > { %877 = vrot.lane.b32.xlu0 %v2347_v8, %s1831_s13 }
 0x267   : > { %879 = vrot.lane.b32.xlu1 %v2353_v11, %s1831_s13 }
 0x269   : > { %729 = vrot.lane.b32.xlu0 %v2373_v18, %s1829_s20 }
 0x26b   : > { %731 = vrot.lane.b32.xlu1 %v2377_v22, %s1829_s20 }
 0x26d   : > { %917 = vrot.lane.b32.xlu0 %v2325_v63, %s1832_s27 }
 0x26f   : > { %919 = vrot.lane.b32.xlu1 %v2329_v1, %s1832_s27 }
 0x271   : > { %765 = vrot.lane.b32.xlu0 %v2373_v18, %s1828_s15 }
 0x273   : > { %767 = vrot.lane.b32.xlu1 %v2377_v22, %s1828_s15 }
 0x275   : > { %801 = vrot.lane.b32.xlu0 %v2373_v18, %s1827_s8 }
 0x277   : > { %915 = vrot.lane.b32.xlu1 %v2353_v11, %s1832_s27 }
 0x279   : > { %837 = vrot.lane.b32.xlu0 %v2373_v18, %s1830_s21 }
 0x27b   : > { %803 = vrot.lane.b32.xlu1 %v2377_v22, %s1827_s8 }
 0x27d   : > { %885 = vrot.lane.b32.xlu0 %v2373_v18, %s1831_s13 }
 0x27f   : > { %947 = vrot.lane.b32.xlu1 %v2301_v54, %s1833_s29 }
 0x281   : > { %913 = vrot.lane.b32.xlu0 %v2347_v8, %s1832_s27 }
 0x283   : > { %839 = vrot.lane.b32.xlu1 %v2377_v22, %s1830_s21 }
 0x285   : > { %921 = vrot.lane.b32.xlu0 %v2373_v18, %s1832_s27 }
 0x287   : > { %955 = vrot.lane.b32.xlu1 %v2329_v1, %s1833_s29 }
 0x289   : > { %945 = vrot.lane.b32.xlu0 %v2299_v49, %s1833_s29 }
 0x28b   : > { %983 = vrot.lane.b32.xlu1 %v2301_v54, %s1835_s22 }
 0x28d   : > { %953 = vrot.lane.b32.xlu0 %v2325_v63, %s1833_s29 }
 0x28f   : > { %991 = vrot.lane.b32.xlu1 %v2329_v1, %s1835_s22 }
 0x291   : > { %981 = vrot.lane.b32.xlu0 %v2299_v49, %s1835_s22 }
 0x293   : > { %887 = vrot.lane.b32.xlu1 %v2377_v22, %s1831_s13 }
 0x295   : > { %989 = vrot.lane.b32.xlu0 %v2325_v63, %s1835_s22 }
 0x297   : > { %951 = vrot.lane.b32.xlu1 %v2353_v11, %s1833_s29 }
 0x299   : > { %949 = vrot.lane.b32.xlu0 %v2347_v8, %s1833_s29 }
 0x29b   : > { %923 = vrot.lane.b32.xlu1 %v2377_v22, %s1832_s27  ;;  %v718_v30 = vpop.permute.xlu0 %717 }
 0x29d   : > { %v720_v33 = vpop.permute.xlu1 %719  ;;  %957 = vrot.lane.b32.xlu0 %v2373_v18, %s1833_s29 }
 0x29f   : > { %987 = vrot.lane.b32.xlu1 %v2353_v11, %s1835_s22  ;;  %v2435_v36 = vpop.permute.xlu0 %753 }
 0x2a1   : > { %v2437_v37 = vpop.permute.xlu1 %755  ;;  %985 = vrot.lane.b32.xlu0 %v2347_v8, %s1835_s22 }
 0x2a3   : > { %959 = vrot.lane.b32.xlu1 %v2377_v22, %s1833_s29  ;;  %v790_v38 = vpop.permute.xlu0 %789 }
 0x2a5   : > { %v792_v39 = vpop.permute.xlu1 %791  ;;  %993 = vrot.lane.b32.xlu0 %v2373_v18, %s1835_s22 }
 0x2a7   : > { %995 = vrot.lane.b32.xlu1 %v2377_v22, %s1835_s22  ;;  %v826_v40 = vpop.permute.xlu0 %825 }
 0x2a9   : > { %v828_v41 = vpop.permute.xlu1 %827 }
 0x2ab   : > { %v874_v43 = vpop.permute.xlu0 %873 }
 0x2ad   : > { %v876_v44 = vpop.permute.xlu1 %875 }
 0x2af   : > { %v2447_v45 = vpop.permute.xlu0 %909 }
 0x2b1   : > { %v2449_v12 = vpop.permute.xlu1 %911 }
 0x2b3   : > { %v726_v46 = vpop.permute.xlu0 %725 }
 0x2b4   : > { %v733_v47 = vsel %vm392_vm1, %v718_v30, %v726_v46  ;;  %v737_v48 = vsel %vm392_vm1, %v726_v46, %v718_v30 }
 0x2b5   : > { %v728_v10 = vpop.permute.xlu1 %727  ;;  %v741_v56 = vmul.f32 %v737_v48, %v2178_v24  ;;  %v742_v59 = vmul.f32 %v733_v47, %v2182_v25 }
 0x2b6   : > { %v734_v53 = vsel %vm392_vm1, %v720_v33, %v728_v10  ;;  %v738_v55 = vsel %vm392_vm1, %v728_v10, %v720_v33 }
 0x2b7   : > { %v743_v57 = vmul.f32 %v738_v55, %v2178_v24  ;;  %v2461_v58 = vpop.permute.xlu0 %761  ;;  %v744_v60 = vmul.f32 %v734_v53, %v2182_v25 }
 0x2b8   : > { %v773_v61 = vsel %vm411_vm2, %v2461_v58, %v2435_v36  ;;  %v769_v33 = vsel %vm411_vm2, %v2435_v36, %v2461_v58 }
 0x2b9   : > { %v764_v62 = vpop.permute.xlu1 %763  ;;  %v750_v3 = vpack.c.bf16 %v744_v60, %v742_v59  ;;  %v749_v5 = vpack.c.bf16 %v743_v57, %v741_v56  ;;  %v2473_v9 = vmul.f32 %v773_v61, %v2186_v26  ;;  %v778_v36 = vmul.f32 %v769_v33, %v2190_v27 }
 0x2ba   : > { %v774_v7 = vsel %vm411_vm2, %v764_v62, %v2437_v37  ;;  %v770_v59 = vsel %vm411_vm2, %v2437_v37, %v764_v62 }
 0x2bb   : > { %v2476_v15 = vmul.f32 %v774_v7, %v2186_v26  ;;  %1062 = vmatprep.subr.bf16.mxu1 %v750_v3  ;;  %v798_v4 = vpop.permute.xlu0 %797  ;;  %v780_v13 = vmul.f32 %v770_v59, %v2190_v27 }
 0x2bc   : > { %v805_v16 = vsel %vm430_vm0, %v790_v38, %v798_v4  ;;  %v809_v17 = vsel %vm430_vm0, %v798_v4, %v790_v38  ;;  %1063 = vmatpush1.bf16.msra.mxu1 %v749_v5 }
 0x2bd   : > { %v800_v30 = vpop.permute.xlu1 %799  ;;  %v2489_v47 = vmul.f32 %v809_v17, %v2174_v23  ;;  %v2492_v48 = vmul.f32 %v805_v16, %v2162_v19 }
 0x2be   : > { %v806_v34 = vsel %vm430_vm0, %v792_v39, %v800_v30  ;;  %v810_v46 = vsel %vm430_vm0, %v800_v30, %v792_v39 }
 0x2bf   : > { %v2495_v10 = vmul.f32 %v810_v46, %v2174_v23  ;;  %v2498_v38 = vmul.f32 %v806_v34, %v2162_v19  ;;  %v834_v53 = vpop.permute.xlu0 %833 }
 0x2c0   : > { %v841_v55 = vsel %vm449_vm3, %v826_v40, %v834_v53  ;;  %v845_v56 = vsel %vm449_vm3, %v834_v53, %v826_v40 }
 0x2c1   : > { %v836_v39 = vpop.permute.xlu1 %835  ;;  %v2513_v3 = vmul.f32 %v845_v56, %v2193_v28  ;;  %v2516_v5 = vmul.f32 %v841_v55, %v2196_v29 }
 0x2c2   : > { %v842_v60 = vsel %vm449_vm3, %v828_v41, %v836_v39  ;;  %v846_v61 = vsel %vm449_vm3, %v836_v39, %v828_v41 }
 0x2c3   : > { %v2519_v40 = vmul.f32 %v846_v61, %v2193_v28  ;;  %v2522_v7 = vmul.f32 %v842_v60, %v2196_v29  ;;  %v882_v4 = vpop.permute.xlu0 %881 }
 0x2c4   : > { %v889_v16 = vsel %vm486_vm4, %v874_v43, %v882_v4  ;;  %v893_v17 = vsel %vm486_vm4, %v882_v4, %v874_v43 }
 0x2c5   : > { %v884_v41 = vpop.permute.xlu1 %883  ;;  %v2537_v55 = vmul.f32 %v889_v16, %v2202_v31  ;;  %v2540_v56 = vmul.f32 %v893_v17, %v2205_v32 }
 0x2c6   : > { %v890_v46 = vsel %vm486_vm4, %v876_v44, %v884_v41  ;;  %v894_v53 = vsel %vm486_vm4, %v884_v41, %v876_v44 }
 0x2c7   : > { %2971 = vst [vmem:[#allocation20_spill] sm:$0xff] %v2537_v55  ;;  %v2543_v43 = vmul.f32 %v890_v46, %v2202_v31  ;;  %v2546_v39 = vmul.f32 %v894_v53, %v2205_v32  ;;  %v722_v60 = vpop.permute.xlu0 %721 }
 0x2c9   : > { %v724_v61 = vpop.permute.xlu1 %723 }
 0x2cb   : > { %v758_v41 = vpop.permute.xlu0 %757 }
 0x2cd   : > { %v760_v16 = vpop.permute.xlu1 %759 }
 0x2cf   : > { %v794_v2 = vpop.permute.xlu0 %793 }
 0x2d1   : > { %v796_v34 = vpop.permute.xlu1 %795 }
 0x2d3   : > { %v2552_v17 = vpop.permute.xlu0 %829 }
 0x2d5   : > { %v2554_v30 = vpop.permute.xlu1 %831 }
 0x2d7   : > { %v2556_v46 = vpop.permute.xlu0 %877 }
 0x2d9   : > { %v2558_v53 = vpop.permute.xlu1 %879 }
 0x2db   : > { %v730_v4 = vpop.permute.xlu0 %729 }
 0x2dc   : > { %v735_v44 = vsel %vm392_vm1, %v722_v60, %v730_v4  ;;  %v739_v57 = vsel %vm392_vm1, %v730_v4, %v722_v60 }
 0x2dd   : > { %v732_v14 = vpop.permute.xlu1 %731  ;;  %v745_v62 = vmul.f32 %v739_v57, %v2178_v24  ;;  %v746_v42 = vmul.f32 %v735_v44, %v2182_v25 }
 0x2de   : > { %v736_v35 = vsel %vm392_vm1, %v724_v61, %v732_v14  ;;  %v740_v37 = vsel %vm392_vm1, %v732_v14, %v724_v61 }
 0x2df   : > { %v747_v60 = vmul.f32 %v740_v37, %v2178_v24  ;;  %v748_v4 = vmul.f32 %v736_v35, %v2182_v25  ;;  %v918_v55 = vpop.permute.xlu0 %917  ;;  %v786_v35 = vpack.c.bf16 %v780_v13, %v778_v36 }
 0x2e0   : > { %v925_v58 = vsel %vm505_vm6, %v2447_v45, %v918_v55  ;;  %v929_v59 = vsel %vm505_vm6, %v918_v55, %v2447_v45 }
 0x2e1   : > { %v920_v14 = vpop.permute.xlu1 %919  ;;  %v752_v61 = vpack.c.bf16 %v748_v4, %v746_v42  ;;  %v751_v57 = vpack.c.bf16 %v747_v60, %v745_v62  ;;  %v2594_v33 = vmul.f32 %v925_v58, %v2226_v50  ;;  %v2597_v44 = vmul.f32 %v929_v59, %v2229_v51 }
 0x2e2   : > { %v926_v24 = vsel %vm505_vm6, %v2449_v12, %v920_v14  ;;  %v930_v25 = vsel %vm505_vm6, %v920_v14, %v2449_v12 }
 0x2e3   : > { %v2600_v45 = vmul.f32 %v926_v24, %v2226_v50  ;;  %v2603_v42 = vmul.f32 %v930_v25, %v2229_v51  ;;  %1064 = vmatprep.subr.bf16.mxu1 %v752_v61  ;;  %v766_v55 = vpop.permute.xlu0 %765 }
 0x2e4   : > { %v771_v37 = vsel %vm411_vm2, %v758_v41, %v766_v55  ;;  %v775_v13 = vsel %vm411_vm2, %v766_v55, %v758_v41  ;;  %1065 = vmatpush1.bf16.msra.mxu1 %v751_v57  ;;  %v2972_v57 = vpack.c.bf16 %v2476_v15, %v2473_v9 }
 0x2e5   : > { %v768_v12 = vpop.permute.xlu1 %767  ;;  %1066 = vmatprep.subr.bf16.mxu1 %v786_v35  ;;  %v942_v62 = vpack.c.bf16 %v2603_v42, %v2597_v44  ;;  %v941_v60 = vpack.c.bf16 %v2600_v45, %v2594_v33  ;;  %v781_v58 = vmul.f32 %v775_v13, %v2186_v26  ;;  %v782_v59 = vmul.f32 %v771_v37, %v2190_v27  ;;  %v2980_v42 = vld [vmem:[#allocation19_spill] sm:$0xff] }
 0x2e6   : > { %v772_v4 = vsel %vm411_vm2, %v760_v16, %v768_v12  ;;  %v776_v36 = vsel %vm411_vm2, %v768_v12, %v760_v16 }
 0x2e7   : > { %v783_v41 = vmul.f32 %v776_v36, %v2186_v26  ;;  %v784_v14 = vmul.f32 %v772_v4, %v2190_v27  ;;  %v802_v61 = vpop.permute.xlu0 %801  ;;  %v2973_v27 = vpack.c.bf16 %v2498_v38, %v2492_v48 }
 0x2e8   : > { %1067 = vmatpush1.bf16.msra.mxu1 %v2972_v57  ;;  %v807_v16 = vsel %vm430_vm0, %v794_v2, %v802_v61  ;;  %v811_v37 = vsel %vm430_vm0, %v802_v61, %v794_v2  ;;  %v864_v61 = vmul.f32 %v2329_v1, %v2169_v21  ;;  %v862_v1 = vmul.f32 %v2325_v63, %v2169_v21 }
 0x2e9   : > { %v2624_v24 = vpop.permute.xlu1 %915  ;;  %v788_v25 = vpack.c.bf16 %v784_v14, %v782_v59  ;;  %v787_v35 = vpack.c.bf16 %v783_v41, %v781_v58  ;;  %v817_v13 = vmul.f32 %v811_v37, %v2174_v23  ;;  %v818_v12 = vmul.f32 %v807_v16, %v2162_v19 }
 0x2ea   : > { %v2974_v58 = vpack.c.bf16 %v2495_v10, %v2489_v47  ;;  %v2975_v47 = vpack.c.bf16 %v2522_v7, %v2516_v5  ;;  %v863_v37 = vmul.f32 %v2301_v54, %v2166_v20  ;;  %v865_v63 = vmul.f32 %v2347_v8, %v2166_v20 }
 0x2eb   : > { %1068 = vmatprep.subr.bf16.mxu1 %v788_v25  ;;  %v838_v55 = vpop.permute.xlu0 %837  ;;  %v867_v54 = vmul.f32 %v2353_v11, %v2166_v20 }
 0x2ec   : > { %1069 = vmatpush1.bf16.msra.mxu1 %v787_v35  ;;  %v2976_v35 = vpack.c.bf16 %v2519_v40, %v2513_v3  ;;  %v868_v3 = vmul.f32 %v2377_v22, %v2169_v21  ;;  %v861_v40 = vmul.f32 %v2299_v49, %v2166_v20 }
 0x2ed   : > { %v804_v26 = vpop.permute.xlu1 %803  ;;  %1070 = vmatprep.subr.bf16.mxu1 %v2973_v27 }
 0x2ee   : > { %v808_v9 = vsel %vm430_vm0, %v796_v34, %v804_v26  ;;  %v812_v15 = vsel %vm430_vm0, %v804_v26, %v796_v34  ;;  %v843_v34 = vsel %vm449_vm3, %v2552_v17, %v838_v55 }
 0x2ef   : > { %v819_v4 = vmul.f32 %v812_v15, %v2174_v23  ;;  %v820_v2 = vmul.f32 %v808_v9, %v2162_v19  ;;  %v886_v36 = vpop.permute.xlu0 %885  ;;  %v847_v19 = vsel %vm449_vm3, %v838_v55, %v2552_v17  ;;  %v854_v17 = vmul.f32 %v843_v34, %v2196_v29 }
 0x2f0   : > { %1071 = vmatpush1.bf16.msra.mxu1 %v2974_v58  ;;  %v853_v57 = vmul.f32 %v847_v19, %v2193_v28  ;;  %v869_v9 = vpack.c.bf16 %v863_v37, %v861_v40  ;;  %v891_v49 = vsel %vm486_vm4, %v2556_v46, %v886_v36  ;;  %v895_v22 = vsel %vm486_vm4, %v886_v36, %v2556_v46 }
 0x2f1   : > { %v2644_v48 = vpop.permute.xlu1 %947  ;;  %v824_v38 = vpack.c.bf16 %v820_v2, %v818_v12  ;;  %v823_v59 = vpack.c.bf16 %v819_v4, %v817_v13  ;;  %v871_v12 = vpack.c.bf16 %v867_v54, %v865_v63  ;;  %v2977_v4 = vpack.c.bf16 %v2546_v39, %v2540_v56  ;;  %v2981_v63 = vld [vmem:[#allocation18_spill] sm:$0xff] }
 0x2f2   : > { %v901_v36 = vmul.f32 %v891_v49, %v2202_v31  ;;  %v902_v58 = vmul.f32 %v895_v22, %v2205_v32 }
 0x2f3   : > { %1072 = vmatprep.subr.bf16.mxu1 %v824_v38  ;;  %v2646_v41 = vpop.permute.xlu0 %913 }
 0x2f4   : > { %1073 = vmatpush1.bf16.msra.mxu1 %v823_v59 }
 0x2f5   : > { %v840_v23 = vpop.permute.xlu1 %839  ;;  %1074 = vmatprep.subr.bf16.mxu1 %v2975_v47 }
 0x2f6   : > { %v844_v10 = vsel %vm449_vm3, %v2554_v30, %v840_v23  ;;  %v848_v14 = vsel %vm449_vm3, %v840_v23, %v2554_v30 }
 0x2f7   : > { %v855_v25 = vmul.f32 %v848_v14, %v2193_v28  ;;  %v856_v5 = vmul.f32 %v844_v10, %v2196_v29  ;;  %v922_v7 = vpop.permute.xlu0 %921  ;;  %v870_v28 = vpack.c.bf16 %v864_v61, %v862_v1  ;;  %v866_v29 = vmul.f32 %v2373_v18, %v2169_v21 }
 0x2f8   : > { %1075 = vmatpush1.bf16.msra.mxu1 %v2976_v35 }
 0x2f9   : > { %v2672_v55 = vpop.permute.xlu1 %955  ;;  %v860_v16 = vpack.c.bf16 %v856_v5, %v854_v17  ;;  %v859_v30 = vpack.c.bf16 %v855_v25, %v853_v57  ;;  %v872_v13 = vpack.c.bf16 %v868_v3, %v866_v29  ;;  %v927_v57 = vsel %vm505_vm6, %v2646_v41, %v922_v7 }
 0x2fa   : > { %v931_v17 = vsel %vm505_vm6, %v922_v7, %v2646_v41  ;;  %v966_v41 = vsel %vm524_vm9, %v2672_v55, %v2644_v48 }
 0x2fb   : > { %1076 = vmatprep.subr.bf16.mxu1 %v860_v16  ;;  %v946_v26 = vpop.permute.xlu0 %945  ;;  %v937_v16 = vmul.f32 %v927_v57, %v2226_v50  ;;  %v938_v1 = vmul.f32 %v931_v17, %v2229_v51  ;;  %v972_v40 = vmul.f32 %v966_v41, %v2980_v42  ;;  %v1019_v17 = vld [vmem:[#allocation10 + $0x10] sm:$0xff] }
 0x2fc   : > { %1077 = vmatpush1.bf16.msra.mxu1 %v859_v30 }
 0x2fd   : > { %v984_v27 = vpop.permute.xlu1 %983  ;;  %1078 = vmatprep.subr.bf16.mxu1 %v870_v28 }
 0x2ff   : > { %v954_v15 = vpop.permute.xlu0 %953 }
 0x300   : > { %1079 = vmatpush1.bf16.msra.mxu1 %v869_v9  ;;  %v965_v35 = vsel %vm524_vm9, %v954_v15, %v946_v26  ;;  %v961_v44 = vsel %vm524_vm9, %v946_v26, %v954_v15 }
 0x301   : > { %v992_v18 = vpop.permute.xlu1 %991  ;;  %1080 = vmatprep.subr.bf16.mxu1 %v872_v13  ;;  %v969_v54 = vmul.f32 %v961_v44, %v2981_v63  ;;  %v1021_v44 = vld [vmem:[#allocation10 + $0x20] sm:$0xff] }
 0x302   : > { %v998_v8 = vsel %vm543_vm10, %v984_v27, %v992_v18  ;;  %v1002_v20 = vsel %vm543_vm10, %v992_v18, %v984_v27 }
 0x303   : > { %v982_v21 = vpop.permute.xlu0 %981  ;;  %v1007_v56 = vmul.f32 %v998_v8, %v2278_v52  ;;  %v1008_v39 = vmul.f32 %v1002_v20, %v2281_v0 }
 0x304   : > { %1081 = vmatpush1.bf16.msra.mxu1 %v871_v12 }
 0x305   : > { %v888_v11 = vpop.permute.xlu1 %887  ;;  %1082 = vmatprep.subr.bf16.mxu1 %v2977_v4 }
 0x306   : > { %v892_v2 = vsel %vm486_vm4, %v2558_v53, %v888_v11  ;;  %v896_v46 = vsel %vm486_vm4, %v888_v11, %v2558_v53  ;;  %v2978_v53 = vld [vmem:[#allocation20_spill] sm:$0xff] }
 0x307   : > { %v903_v38 = vmul.f32 %v892_v2, %v2202_v31  ;;  %v904_v59 = vmul.f32 %v896_v46, %v2205_v32  ;;  %v990_v34 = vpop.permute.xlu0 %989  ;;  %v2979_v47 = vpack.c.bf16 %v2543_v43, %v2978_v53  ;;  %v1590_v53 = vld [vmem:[#allocation9 + $0x8] ss:$12 sps:$4 sm:$0xff]  }
 0x308   : > { %v997_v19 = vsel %vm543_vm10, %v982_v21, %v990_v34  ;;  %v1001_v23 = vsel %vm543_vm10, %v990_v34, %v982_v21 }
 0x309   : > { %1083 = vmatpush1.bf16.msra.mxu1 %v2979_v47  ;;  %v1005_v10 = vmul.f32 %v997_v19, %v2278_v52  ;;  %v1006_v31 = vmul.f32 %v1001_v23, %v2281_v0  ;;  %v952_v32 = vpop.permute.xlu1 %951  ;;  %v908_v14 = vpack.c.bf16 %v904_v59, %v902_v58  ;;  %v907_v61 = vpack.c.bf16 %v903_v38, %v901_v36  ;;  %v1593_v47 = vld [vmem:[#allocation9 + $0x18] ss:$12 sps:$4 sm:$0xff]  }
 0x30b   : > { %v1013_v25 = vpack.c.bf16 %v1007_v56, %v1005_v10  ;;  %v950_v5 = vpop.permute.xlu0 %949  ;;  %1084 = vmatprep.subr.bf16.mxu1 %v908_v14  ;;  %v1014_v43 = vpack.c.bf16 %v1008_v39, %v1006_v31  ;;  %v1587_v56 = vld [vmem:[#allocation9] ss:$12 sps:$4 sm:$0xff]   ;;  %v1591_v39 = vld [vmem:[#allocation9 + $0x1c] ss:$12 sps:$4 sm:$0xff]   ;;  %v2982_v10 = vmov 0  }
 0x30c   : > { %v1018_v31 = vld [vmem:[#allocation10 + $0x8] sm:$0xff] }
 0x30d   : > { %1085 = vmatpush1.bf16.msra.mxu1 %v907_v61  ;;  %v924_v30 = vpop.permute.xlu1 %923  ;;  %1115 = vmatprep.subr.bf16.mxu0 %v1014_v43 }
 0x30e   : > { %1086 = vmatprep.subr.bf16.mxu1 %v942_v62  ;;  %v928_v7 = vsel %vm505_vm6, %v2624_v24, %v924_v30  ;;  %v932_v37 = vsel %vm505_vm6, %v924_v30, %v2624_v24  ;;  %1116 = vmatpush1.bf16.msra.mxu0 %v1013_v25  ;;  %v970_v62 = vmul.f32 %v965_v35, %v2980_v42 }
 0x30f   : > { %v939_v28 = vmul.f32 %v928_v7, %v2226_v50  ;;  %v940_v29 = vmul.f32 %v932_v37, %v2229_v51  ;;  %v958_v3 = vpop.permute.xlu0 %957  ;;  %v962_v24 = vsel %vm524_vm9, %v2644_v48, %v2672_v55 }
 0x310   : > { %v978_v51 = vpack.c.bf16 %v972_v40, %v970_v62  ;;  %v971_v15 = vmul.f32 %v962_v24, %v2981_v63  ;;  %v963_v33 = vsel %vm524_vm9, %v950_v5, %v958_v3  ;;  %v967_v45 = vsel %vm524_vm9, %v958_v3, %v950_v5  ;;  %v1020_v5 = vld [vmem:[#allocation10 + $0x18] sm:$0xff]  ;;  %v1023_v40 = vld [vmem:[#allocation10 + $0x30] sm:$0xff] }
 0x311   : > { %1087 = vmatpush1.bf16.msra.mxu1 %v941_v60  ;;  %v988_v27 = vpop.permute.xlu1 %987  ;;  %v944_v26 = vpack.c.bf16 %v940_v29, %v938_v1  ;;  %v943_v9 = vpack.c.bf16 %v939_v28, %v937_v16  ;;  %v973_v18 = vmul.f32 %v963_v33, %v2981_v63  ;;  %v974_v12 = vmul.f32 %v967_v45, %v2980_v42  ;;  %v1022_v29 = vld [vmem:[#allocation10 + $0x28] sm:$0xff] }
 0x312   : > { %v977_v13 = vpack.c.bf16 %v971_v15, %v969_v54 }
 0x313   : > { %v986_v50 = vpop.permute.xlu0 %985  ;;  %1088 = vmatprep.subr.bf16.mxu1 %v944_v26 }
 0x315   : > { %1089 = vmatpush1.bf16.msra.mxu1 %v943_v9  ;;  %v960_v60 = vpop.permute.xlu1 %959 }
 0x316   : > { %1090 = vmatprep.subr.bf16.mxu1 %v978_v51  ;;  %v964_v48 = vsel %vm524_vm9, %v952_v32, %v960_v60  ;;  %v968_v55 = vsel %vm524_vm9, %v960_v60, %v952_v32 }
 0x317   : > { %v975_v21 = vmul.f32 %v964_v48, %v2981_v63  ;;  %v976_v49 = vmul.f32 %v968_v55, %v2980_v42  ;;  %v994_v22 = vpop.permute.xlu0 %993  ;;  %v1024_v63 = vld [vmem:[#allocation10 + $0x38] sm:$0xff] }
 0x318   : > { %v999_v8 = vsel %vm543_vm10, %v986_v50, %v994_v22  ;;  %v1003_v20 = vsel %vm543_vm10, %v994_v22, %v986_v50 }
 0x319   : > { %1091 = vmatpush1.bf16.msra.mxu1 %v977_v13  ;;  %v996_v11 = vpop.permute.xlu1 %995  ;;  %v980_v4 = vpack.c.bf16 %v976_v49, %v974_v12  ;;  %v979_v2 = vpack.c.bf16 %v975_v21, %v973_v18  ;;  %v1009_v58 = vmul.f32 %v999_v8, %v2278_v52  ;;  %v1010_v38 = vmul.f32 %v1003_v20, %v2281_v0 }
 0x31a   : > { %v1000_v46 = vsel %vm543_vm10, %v988_v27, %v996_v11  ;;  %v1004_v36 = vsel %vm543_vm10, %v996_v11, %v988_v27 }
 0x31b   : > { %v1011_v59 = vmul.f32 %v1000_v46, %v2278_v52  ;;  %v1012_v34 = vmul.f32 %v1004_v36, %v2281_v0  ;;  %1092 = vmatprep.subr.bf16.mxu1 %v980_v4  ;;  %v1594_v52 = vld [vmem:[#allocation9 + $0x20] ss:$12 sps:$4 sm:$0xff]   ;;  %v1017_v0 = vld [vmem:[#allocation10] sm:$0xff] }
 0x31d   : > { %1093 = vmatpush1.bf16.msra.mxu1 %v979_v2  ;;  %v1015_v19 = vpack.c.bf16 %v1011_v59, %v1009_v58  ;;  %v1016_v23 = vpack.c.bf16 %v1012_v34, %v1010_v38 }
 0x31f   : > { %1117 = vmatprep.subr.bf16.mxu0 %v1016_v23 }
 0x320   : > { %1095 = vmatmul.mubr.bf16.vlgmr.msra.gmra.mrb[0].mxu1 %v1587_v56  ;;  %1118 = vmatpush1.bf16.msra.mxu0 %v1015_v19 }
 0x321   : > { %1104 = vmatprep.mubr.bf16.mxu1 %v1591_v39 }
 0x323   : > { %1455 = vmatmul.mubr.msk.bf16.vlgmr.msra.gmra.mrb[8].mxu0 %vm1055_vm12, %v1590_v53  ;;  %v1272_v53 = vld [vmem:[%s2936_s2] sm:$0x3] }
 0x324   : > { %1157 = vmatprep.mubr.bf16.mxu0 %v2982_v10 }
 0x328   : > { %1105 = vmatmul.mubr.bf16.gmra.mrb[4].mxu1 %v1593_v47 }
 0x32b   : > { %1456 = vmatmul.mubr.msk.bf16.gmra.mrb[12].mxu0 %vm1055_vm12, %v1594_v52 }
 0x3f3   : > { %v1096_v32 = vpop.f32.mrb[0].mxu1 }
 0x3f4   : > { %v1097_v14 = vadd.f32 %v1096_v32, %v1017_v0  ;;  %v1098_v61 = vpop.f32.mrb[1].mxu1 }
 0x3f5   : > { %v1099_v57 = vadd.f32 %v1098_v61, %v1018_v31  ;;  %v1100_v25 = vpop.f32.mrb[2].mxu1 }
 0x3f6   : > { %v1102_v43 = vpop.f32.mrb[3].mxu1  ;;  %v1149_v35 = vpop.f32.mrb[8].mxu0  ;;  %v1101_v16 = vadd.f32 %v1100_v25, %v1019_v17 }
 0x3f7   : > { %v1150_v30 = vadd.f32 %v1149_v35, %v1097_v14  ;;  %v1151_v1 = vpop.f32.mrb[9].mxu0  ;;  %v1103_v37 = vadd.f32 %v1102_v43, %v1020_v5  ;;  %v2983_v14 = vld [vmem:[#allocation16_spill] sm:$0xff] }
 0x3f8   : > { %v1152_v41 = vadd.f32 %v1151_v1, %v1099_v57  ;;  %v1153_v7 = vpop.f32.mrb[10].mxu0  ;;  %v2857_v61 = vrot.slane %v1272_v53, %v2983_v14  ;;  %v2984_v57 = vld [vmem:[#allocation17_spill] sm:$0xff] }
 0x3f9   : > { %v2785_v42 = vmax.f32 %v1150_v30, 0.0  ;;  %v1154_v62 = vadd.f32 %v1153_v7, %v1101_v16  ;;  %v1155_v28 = vpop.f32.mrb[11].mxu0  ;;  %v2860_v17 = vrot.slane %v1272_v53, %v2984_v57 }
 0x3fa   : > { %v1156_v3 = vadd.f32 %v1155_v28, %v1103_v37  ;;  %v1169_v49 = vmax.f32 %v1152_v41, 0.0 }
 0x3fb   : > { %v1106_v24 = vpop.f32.mrb[4].mxu1  ;;  %v2787_v27 = vmax.f32 %v1154_v62, 0.0  ;;  %1176 = vrot.lane.b32.xlu0 %v2785_v42, %s1831_s13 }
 0x3fc   : > { %v1107_v26 = vadd.f32 %v1106_v24, %v1021_v44  ;;  %v1108_v9 = vpop.f32.mrb[5].mxu1  ;;  %v2801_v22 = vmax.f32 %v1156_v3, 0.0 }
 0x3fd   : > { %v1109_v54 = vadd.f32 %v1108_v9, %v1022_v29  ;;  %v1110_v50 = vpop.f32.mrb[6].mxu1  ;;  %1178 = vrot.lane.b32.xlu1 %v2787_v27, %s1831_s13 }
 0x3fe   : > { %v1111_v51 = vadd.f32 %v1110_v50, %v1023_v40  ;;  %v1112_v15 = vpop.f32.mrb[7].mxu1  ;;  %v1159_v33 = vpop.f32.mrb[12].mxu0 }
 0x3ff   : > { %v1113_v45 = vadd.f32 %v1112_v15, %v1024_v63  ;;  %1208 = vrot.lane.b32.xlu0 %v2785_v42, %s1833_s29  ;;  %v1160_v60 = vadd.f32 %v1159_v33, %v1107_v26  ;;  %v1161_v48 = vpop.f32.mrb[13].mxu0 }
 0x400   : > { %v1162_v55 = vadd.f32 %v1161_v48, %v1109_v54  ;;  %v1163_v13 = vpop.f32.mrb[14].mxu0 }
 0x401   : > { %1210 = vrot.lane.b32.xlu1 %v2787_v27, %s1833_s29  ;;  %v1164_v18 = vadd.f32 %v1163_v13, %v1111_v51  ;;  %v1165_v12 = vpop.f32.mrb[15].mxu0  ;;  %v2809_v8 = vmax.f32 %v1160_v60, 0.0 }
 0x402   : > { %v1166_v21 = vadd.f32 %v1165_v12, %v1113_v45  ;;  %v2826_v11 = vmax.f32 %v1162_v55, 0.0 }
 0x403   : > { %1232 = vrot.lane.b32.xlu0 %v2785_v42, %s1835_s22  ;;  %v2814_v20 = vmax.f32 %v1164_v18, 0.0 }
 0x404   : > { %v2830_v4 = vmax.f32 %v1166_v21, 0.0 }
 0x405   : > { %1234 = vrot.lane.b32.xlu1 %v2787_v27, %s1835_s22 }
 0x407   : > { %1184 = vrot.lane.b32.xlu0 %v1169_v49, %s1831_s13 }
 0x409   : > { %1186 = vrot.lane.b32.xlu1 %v2801_v22, %s1831_s13 }
 0x40b   : > { %1216 = vrot.lane.b32.xlu0 %v1169_v49, %s1833_s29 }
 0x40d   : > { %1218 = vrot.lane.b32.xlu1 %v2801_v22, %s1833_s29 }
 0x40f   : > { %1240 = vrot.lane.b32.xlu0 %v1169_v49, %s1835_s22 }
 0x411   : > { %1242 = vrot.lane.b32.xlu1 %v2801_v22, %s1835_s22 }
 0x413   : > { %1180 = vrot.lane.b32.xlu0 %v2809_v8, %s1831_s13 }
 0x415   : > { %1182 = vrot.lane.b32.xlu1 %v2814_v20, %s1831_s13 }
 0x417   : > { %1212 = vrot.lane.b32.xlu0 %v2809_v8, %s1833_s29 }
 0x419   : > { %1214 = vrot.lane.b32.xlu1 %v2814_v20, %s1833_s29 }
 0x41b   : > { %1236 = vrot.lane.b32.xlu0 %v2809_v8, %s1835_s22 }
 0x41d   : > { %1238 = vrot.lane.b32.xlu1 %v2814_v20, %s1835_s22 }
 0x41f   : > { %1188 = vrot.lane.b32.xlu0 %v2826_v11, %s1831_s13 }
 0x421   : > { %1190 = vrot.lane.b32.xlu1 %v2830_v4, %s1831_s13 }
 0x423   : > { %1220 = vrot.lane.b32.xlu0 %v2826_v11, %s1833_s29 }
 0x425   : > { %1222 = vrot.lane.b32.xlu1 %v2830_v4, %s1833_s29 }
 0x427   : > { %1244 = vrot.lane.b32.xlu0 %v2826_v11, %s1835_s22 }
 0x429   : > { %1246 = vrot.lane.b32.xlu1 %v2830_v4, %s1835_s22 }
 0x46d   : > { %v1177_v2 = vpop.permute.xlu0 %1176 }
 0x46f   : > { %v1179_v46 = vpop.permute.xlu1 %1178 }
 0x471   : > { %v1209_v36 = vpop.permute.xlu0 %1208 }
 0x473   : > { %v1211_v58 = vpop.permute.xlu1 %1210 }
 0x475   : > { %v1233_v38 = vpop.permute.xlu0 %1232 }
 0x477   : > { %v1235_v59 = vpop.permute.xlu1 %1234 }
 0x479   : > { %v1185_v34 = vpop.permute.xlu0 %1184 }
 0x47a   : > { %v1192_v19 = vsel %vm486_vm4, %v1177_v2, %v1185_v34  ;;  %v1196_v23 = vsel %vm486_vm4, %v1185_v34, %v1177_v2 }
 0x47b   : > { %v1187_v56 = vpop.permute.xlu1 %1186  ;;  %v1200_v0 = vmax.f32 %v2785_v42, %v1192_v19  ;;  %v1201_v31 = vmax.f32 %v1169_v49, %v1196_v23 }
 0x47c   : > { %v1193_v10 = vsel %vm486_vm4, %v1179_v46, %v1187_v56  ;;  %v1197_v52 = vsel %vm486_vm4, %v1187_v56, %v1179_v46 }
 0x47d   : > { %v1217_v39 = vpop.permute.xlu0 %1216  ;;  %v1202_v16 = vmax.f32 %v2787_v27, %v1193_v10  ;;  %v1203_v30 = vmax.f32 %v2801_v22, %v1197_v52 }
 0x47e   : > { %v1224_v25 = vsel %vm524_vm9, %v1209_v36, %v1217_v39  ;;  %v1228_v5 = vsel %vm524_vm9, %v1217_v39, %v1209_v36 }
 0x47f   : > { %v1219_v47 = vpop.permute.xlu1 %1218 }
 0x480   : > { %v1225_v37 = vsel %vm524_vm9, %v1211_v58, %v1219_v47  ;;  %v1229_v44 = vsel %vm524_vm9, %v1219_v47, %v1211_v58 }
 0x481   : > { %v1241_v32 = vpop.permute.xlu0 %1240 }
 0x482   : > { %v1248_v43 = vsel %vm543_vm10, %v1233_v38, %v1241_v32  ;;  %v1252_v35 = vsel %vm543_vm10, %v1241_v32, %v1233_v38 }
 0x483   : > { %v1256_v1 = vmax.f32 %v1224_v25, %v1248_v43  ;;  %v1257_v41 = vmax.f32 %v1228_v5, %v1252_v35  ;;  %v1243_v7 = vpop.permute.xlu1 %1242 }
 0x484   : > { %v1249_v42 = vsel %vm543_vm10, %v1235_v59, %v1243_v7  ;;  %v1253_v62 = vsel %vm543_vm10, %v1243_v7, %v1235_v59 }
 0x485   : > { %v1264_v28 = vmax.f32 %v1200_v0, %v1256_v1  ;;  %v1265_v29 = vmax.f32 %v1201_v31, %v1257_v41  ;;  %v1258_v3 = vmax.f32 %v1225_v37, %v1249_v42  ;;  %v1259_v24 = vmax.f32 %v1229_v44, %v1253_v62  ;;  %v1181_v40 = vpop.permute.xlu0 %1180 }
 0x487   : > { %v1266_v27 = vmax.f32 %v1202_v16, %v1258_v3  ;;  %v1267_v26 = vmax.f32 %v1203_v30, %v1259_v24  ;;  %v1183_v9 = vpop.permute.xlu1 %1182  ;;  %v1284_v63 = vmul.f32 %v2857_v61, %v1264_v28  ;;  %v1285_v54 = vmul.f32 %v2860_v17, %v1265_v29 }
 0x489   : > { %v1213_v50 = vpop.permute.xlu0 %1212  ;;  %v1292_v51 = vadd.f32 %v1285_v54, %v1284_v63  ;;  %v1286_v15 = vmul.f32 %v2857_v61, %v1266_v27  ;;  %v1287_v33 = vmul.f32 %v2860_v17, %v1267_v26 }
 0x48b   : > { %v1215_v45 = vpop.permute.xlu1 %1214  ;;  %1293 = vadd.xlane.f32.xlu0 %v1292_v51  ;;  %v1295_v60 = vadd.f32 %v1287_v33, %v1286_v15 }
 0x48d   : > { %1296 = vadd.xlane.f32.xlu1 %v1295_v60  ;;  %v1237_v48 = vpop.permute.xlu0 %1236 }
 0x48f   : > { %v1239_v55 = vpop.permute.xlu1 %1238 }
 0x491   : > { %v1189_v13 = vpop.permute.xlu0 %1188 }
 0x492   : > { %v1194_v21 = vsel %vm486_vm4, %v1181_v40, %v1189_v13  ;;  %v1198_v49 = vsel %vm486_vm4, %v1189_v13, %v1181_v40 }
 0x493   : > { %v1191_v18 = vpop.permute.xlu1 %1190  ;;  %v1204_v36 = vmax.f32 %v2809_v8, %v1194_v21  ;;  %v1205_v58 = vmax.f32 %v2826_v11, %v1198_v49 }
 0x494   : > { %v1195_v2 = vsel %vm486_vm4, %v1183_v9, %v1191_v18  ;;  %v1199_v46 = vsel %vm486_vm4, %v1191_v18, %v1183_v9 }
 0x495   : > { %v1221_v12 = vpop.permute.xlu0 %1220  ;;  %v1206_v19 = vmax.f32 %v2814_v20, %v1195_v2  ;;  %v1207_v23 = vmax.f32 %v2830_v4, %v1199_v46 }
 0x496   : > { %v1226_v59 = vsel %vm524_vm9, %v1213_v50, %v1221_v12  ;;  %v1230_v34 = vsel %vm524_vm9, %v1221_v12, %v1213_v50 }
 0x497   : > { %v1223_v22 = vpop.permute.xlu1 %1222 }
 0x498   : > { %v1227_v47 = vsel %vm524_vm9, %v1215_v45, %v1223_v22  ;;  %v1231_v10 = vsel %vm524_vm9, %v1223_v22, %v1215_v45 }
 0x499   : > { %v1245_v38 = vpop.permute.xlu0 %1244 }
 0x49a   : > { %v1250_v56 = vsel %vm543_vm10, %v1237_v48, %v1245_v38  ;;  %v1254_v39 = vsel %vm543_vm10, %v1245_v38, %v1237_v48 }
 0x49b   : > { %v1260_v8 = vmax.f32 %v1226_v59, %v1250_v56  ;;  %v1261_v53 = vmax.f32 %v1230_v34, %v1254_v39  ;;  %v1247_v11 = vpop.permute.xlu1 %1246 }
 0x49c   : > { %v1251_v52 = vsel %vm543_vm10, %v1239_v55, %v1247_v11  ;;  %v1255_v0 = vsel %vm543_vm10, %v1247_v11, %v1239_v55 }
 0x49d   : > { %v1268_v20 = vmax.f32 %v1204_v36, %v1260_v8  ;;  %v1269_v31 = vmax.f32 %v1205_v58, %v1261_v53  ;;  %v1262_v4 = vmax.f32 %v1227_v47, %v1251_v52  ;;  %v1263_v32 = vmax.f32 %v1231_v10, %v1255_v0 }
 0x49f   : > { %v1270_v14 = vmax.f32 %v1206_v19, %v1262_v4  ;;  %v1271_v57 = vmax.f32 %v1207_v23, %v1263_v32  ;;  %v1288_v25 = vmul.f32 %v2857_v61, %v1268_v20  ;;  %v1289_v5 = vmul.f32 %v2860_v17, %v1269_v31 }
 0x4a1   : > { %v1298_v43 = vadd.f32 %v1289_v5, %v1288_v25  ;;  %v1290_v35 = vmul.f32 %v2857_v61, %v1270_v14  ;;  %v1291_v16 = vmul.f32 %v2860_v17, %v1271_v57 }
 0x4a3   : > { %1299 = vadd.xlane.f32.xlu0 %v1298_v43  ;;  %v1301_v6 = vadd.f32 %v1291_v16, %v1290_v35 }
 0x4a7   : > { %1302 = vadd.xlane.f32.xlu0 %v1301_v6 }
 0x518   : > { %v1294_v30 = vpop.xlane.xlu0 %1293 }
 0x519   : > { %1305 = vst.msk [vmem:[%s370_s17] sm:$0xff] %vm1304_vm13, %v1294_v30 }
 0x51a   : > { %v1297_v1 = vpop.xlane.xlu1 %1296 }
 0x51b   : > { %1306 = vst.msk [vmem:[%s370_s17 + $0x8] sm:$0xff] %vm1304_vm13, %v1297_v1 }
 0x530   : > { %v1300_v41 = vpop.xlane.xlu0 %1299 }
 0x531   : > { %1307 = vst.msk [vmem:[%s370_s17 + $0x10] sm:$0xff] %vm1304_vm13, %v1300_v41 }
 0x534   : > { %v1303_v61 = vpop.xlane.xlu0 %1302 }
 0x535   : > { %1308 = vst.msk [vmem:[%s370_s17 + $0x18] sm:$0xff] %vm1304_vm13, %v1303_v61 }
 0x536 PF: > { %p20_p2 = scmp.ge.s32.totalorder %s2034_s11, 4   ;;  %s2985_s24 = smov %s1803_s25 }
 0x537   : > { %s2986_s25 = smov %s1807_s26  ;;  %s2987_s26 = smov %s2045_s9 }
 0x538   : > { %s2988_s27 = smov %s2034_s11  ;;  %22 = sbr.rel (!%p20_p2) target bundleno = 6 (0x6), region = 108 }
 0x53f   :  { %1330 = vsyncpa [#allocation3], 1 }
 0x540   :  { %1332 = vsyncpa [#allocation3 + $0x1], 1 }
 0x541   :  { %1333 = vsyncpa [#allocation5], 1 }
 0x542   :  { %1334 = vsyncpa [#allocation8], 1 }
 0x543   :  { %1335 = vsyncpa [#allocation11], 1 }

</bundles_post_ra>
